<compile_context>
chip_gen: v6e
topology: v6e:2x2x1
jax: 0.10.0
libtpu: 0.0.40
codegen_flags: <defaults>
</compile_context>

<pallas_src>
import jax
import jax.numpy as jnp
from jax.experimental import pallas as pl
from jax.experimental.pallas import tpu as pltpu

BN_EPS = 1e-5


def _make_kernel(n_batch, hw, hw_tile, nf, nd, nh_pad, ragged):
    """Build the kernel closure (all sizes static)."""
    inv_b = 1.0 / float(n_batch)
    nh = nf + nd

    def kernel(x_ref,                       # (B*C, hw_tile) flat image tile
               s_ref,                       # (B, B*C) un-flatten selector
               we_ref, be_ref,              # extractor: (B*C, F)/HW , (1, F)
               w1_ref, b1_ref,              # fused layer-1: (F, nh_pad), (1, nh_pad)
               g_ref, bt_ref,               # fused BN gamma/beta: (1, nh_pad)
               wf2_ref, bf2_ref,            # focal layer-2: (NF, NF), (1, NF)
               wd2_ref, bd2_ref,            # distortion layer-2: (ND, ND), (1, ND)
               out_ref,                     # (B, nh_pad) output slab
               pooled_acc):                 # VMEM scratch (B*C, 1) f32
        k = pl.program_id(0)

        @pl.when(k == 0)
        def _():
            pooled_acc[...] = jnp.zeros_like(pooled_acc)

        # Spatial-sum accumulation for this HW tile.  Mask the ragged last
        # tile (un-padded input) so garbage past HW never enters the sum.
        x = x_ref[...]
        if ragged:
            lane = jax.lax.broadcasted_iota(jnp.int32, x.shape, 1)
            x = jnp.where(k * hw_tile + lane < hw, x, 0.0)
        pooled_acc[...] += jnp.sum(x, axis=-1, keepdims=True)

        @pl.when(k == pl.num_programs(0) - 1)
        def _():
            # Feature extractor stand-in: global-average-pool + Linear.
            # 1/HW is pre-folded into we_ref by the wrapper.  The selector S
            # un-flattens the per-row sums on the MXU:
            #   feat = S @ (pooled * we_tiled)  ==  reshape(pooled,(B,C)) @ we
            feat = jnp.dot(s_ref[...], pooled_acc[...] * we_ref[...],
                           preferred_element_type=jnp.float32) + be_ref[...]

            # Fused layer-1 of both heads: (B, F) @ (F, nh_pad).
            h = jnp.dot(feat, w1_ref[...],
                        preferred_element_type=jnp.float32) + b1_ref[...]

            # BatchNorm1d, training-mode batch statistics (biased variance)
            # over the real batch rows (no batch padding anywhere).
            mu = jnp.sum(h, axis=0, keepdims=True) * inv_b
            d = h - mu
            var = jnp.sum(d * d, axis=0, keepdims=True) * inv_b
            a = jnp.maximum(
                d * jax.lax.rsqrt(var + BN_EPS) * g_ref[...] + bt_ref[...],
                0.0)

            # Layer-2 + exact softmax per head (split of the fused activation).
            lf = jnp.dot(a[:, :nf], wf2_ref[...],
                         preferred_element_type=jnp.float32) + bf2_ref[...]
            ld = jnp.dot(a[:, nf:nh], wd2_ref[...],
                         preferred_element_type=jnp.float32) + bd2_ref[...]

            def softmax(z):
                m = jnp.max(z, axis=-1, keepdims=True)
                e = jnp.exp(z - m)
                return e / jnp.sum(e, axis=-1, keepdims=True)

            out = jnp.concatenate([softmax(lf), softmax(ld)], axis=-1)
            if nh_pad > nh:
                out = jnp.concatenate(
                    [out, jnp.zeros((out.shape[0], nh_pad - nh), jnp.float32)],
                    axis=-1)
            # Single lane-dense (128-multiple) store of both heads.
            out_ref[...] = out

    return kernel


def model_forward(x, params, *, buffer_budget_bytes=4 << 20):
    """x: (B, C, H, W) float32 NCHW. Returns (focal_softmax, distortion_softmax)."""
    B, C, H, W = x.shape
    R, HW = B * C, H * W
    nf = params["wf1"].shape[1]
    nd = params["wd1"].shape[1]
    nh = nf + nd
    nh_pad = -(-nh // 128) * 128
    feat_dim = params["we"].shape[1]

    # Stream x flat as (B*C, HW): dense sublanes, no padded copy of the image.
    x_flat = x.reshape(R, HW)

    # HW tile: as large as the per-buffer VMEM budget allows (multiple of 128),
    # or the whole un-padded HW extent if it fits in a single tile.
    sub_rows = -(-R // 8) * 8
    max_lanes = max(128, (buffer_budget_bytes // (sub_rows * 4)) // 128 * 128)
    if HW <= max_lanes:
        hw_tile, num_k, ragged = HW, 1, False
    else:
        hw_tile = max_lanes
        num_k = -(-HW // hw_tile)
        ragged = (HW % hw_tile) != 0

    # Fold 1/HW of the average pool into the (row-tiled) extractor weight.
    we_exp = jnp.tile(params["we"], (B, 1)) * (1.0 / float(HW))     # (B*C, F)
    # Selector that un-flattens (B*C,) pooled sums back to (B, C) on the MXU.
    sel = jnp.repeat(jnp.eye(B, dtype=jnp.float32), C, axis=1)      # (B, B*C)

    # Fuse both heads' layer-1 / BN parameters along the output-feature dim,
    # padded to a lane-dense 128-multiple (pad columns stay exactly zero).
    def padw(a):
        return jnp.pad(a, ((0, 0), (0, nh_pad - nh)))
    w1_cat = padw(jnp.concatenate([params["wf1"], params["wd1"]], axis=1))
    b1_cat = padw(jnp.concatenate([params["bf1"], params["bd1"]], axis=1))
    g_cat = padw(jnp.concatenate([params["g1"], params["g2"]], axis=1))
    bt_cat = padw(jnp.concatenate([params["bt1"], params["bt2"]], axis=1))

    x_buf_bytes = 2 * sub_rows * hw_tile * 4        # double-buffered x tile
    vmem_limit = int(min(96 << 20, max(32 << 20, x_buf_bytes + (8 << 20))))

    def build(buffered_weights):
        def whole(shape):
            if buffered_weights:
                # Constant block index across k: single-buffer to save VMEM.
                return pl.BlockSpec(shape, lambda *_: (0,) * len(shape),
                                    pipeline_mode=pl.Buffered(1))
            return pl.BlockSpec(shape, lambda *_: (0,) * len(shape))

        return pl.pallas_call(
            _make_kernel(B, HW, hw_tile, nf, nd, nh_pad, ragged),
            out_shape=jax.ShapeDtypeStruct((B, nh_pad), jnp.float32),
            grid_spec=pltpu.PrefetchScalarGridSpec(
                num_scalar_prefetch=0,
                grid=(num_k,),
                in_specs=[
                    pl.BlockSpec((R, hw_tile), lambda k: (0, k)),
                    whole((B, R)),
                    whole((R, feat_dim)), whole((1, feat_dim)),
                    whole((feat_dim, nh_pad)), whole((1, nh_pad)),
                    whole((1, nh_pad)), whole((1, nh_pad)),
                    whole((nf, nf)), whole((1, nf)),
                    whole((nd, nd)), whole((1, nd)),
                ],
                out_specs=pl.BlockSpec((B, nh_pad), lambda k: (0, 0)),
                scratch_shapes=[pltpu.VMEM((R, 1), jnp.float32)],
            ),
            compiler_params=pltpu.CompilerParams(
                # Output/accumulator carried across k -> must stay "arbitrary".
                dimension_semantics=("arbitrary",),
                vmem_limit_bytes=vmem_limit),
        )

    args = (x_flat, sel, we_exp, params["be"], w1_cat, b1_cat, g_cat, bt_cat,
            params["wf2"], params["bf2"], params["wd2"], params["bd2"])
    try:
        out = build(True)(*args)
    except Exception:
        # pl.Buffered(1) not supported by this jax version: fall back to the
        # default double-buffered specs (only costs a little extra VMEM).
        out = build(False)(*args)

    return out[:, :nf], out[:, nf:nh]


def reference_forward(x, params):
    """Pure-JAX reference (exact math, no padding)."""
    B, C, H, W = x.shape
    pooled = jnp.mean(x.reshape(B, C, H * W), axis=-1)
    feat = pooled @ params["we"] + params["be"]

    def head(w1, b1, g, bt, w2, b2):
        h = feat @ w1 + b1
        mu = jnp.mean(h, axis=0, keepdims=True)
        var = jnp.mean((h - mu) ** 2, axis=0, keepdims=True)
        a = jnp.maximum((h - mu) / jnp.sqrt(var + BN_EPS) * g + bt, 0.0)
        return jax.nn.softmax(a @ w2 + b2, axis=-1)

    return (head(params["wf1"], params["bf1"], params["g1"], params["bt1"],
                 params["wf2"], params["bf2"]),
            head(params["wd1"], params["bd1"], params["g2"], params["bt2"],
                 params["wd2"], params["bd2"]))


def init_params(key, c, feat_dim, n_focal, n_distortion):
    """Deterministic parameter init (PyTorch-style uniform ±1/sqrt(fan_in))."""
    ks = jax.random.split(key, 10)

    def lin(k, fan_in, fan_out):
        bound = 1.0 / jnp.sqrt(fan_in)
        kw, kb = jax.random.split(k)
        w = jax.random.uniform(kw, (fan_in, fan_out), jnp.float32, -bound, bound)
        b = jax.random.uniform(kb, (1, fan_out), jnp.float32, -bound, bound)
        return w, b

    we, be = lin(ks[0], c, feat_dim)
    wf1, bf1 = lin(ks[1], feat_dim, n_focal)
    wf2, bf2 = lin(ks[2], n_focal, n_focal)        # original: Linear(1024, n_focal)
    wd1, bd1 = lin(ks[3], feat_dim, n_distortion)
    wd2, bd2 = lin(ks[4], n_distortion, n_distortion)

    return dict(
        we=we, be=be,
        wf1=wf1, bf1=bf1,
        g1=jnp.ones((1, n_focal), jnp.float32),
        bt1=jnp.zeros((1, n_focal), jnp.float32),
        wf2=wf2, bf2=bf2,
        wd1=wd1, bd1=bd1,
        g2=jnp.ones((1, n_distortion), jnp.float32),
        bt2=jnp.zeros((1, n_distortion), jnp.float32),
        wd2=wd2, bd2=bd2,
    )


if __name__ == "__main__":
    B, C, H, W = 2, 4, 16, 16
    FEAT, N_FOCAL, N_DIST = 64, 32, 32

    key = jax.random.PRNGKey(0)
    kx, kp = jax.random.split(key)
    x = jax.random.normal(kx, (B, C, H, W), jnp.float32)
    params = init_params(kp, C, FEAT, N_FOCAL, N_DIST)

    focal, distortion = jax.block_until_ready(model_forward(x, params))

    assert focal.shape == (B, N_FOCAL) and distortion.shape == (B, N_DIST)
    # exact softmax -> rows sum to 1
    assert jnp.allclose(jnp.sum(focal, axis=-1), 1.0, atol=1e-5)
    assert jnp.allclose(jnp.sum(distortion, axis=-1), 1.0, atol=1e-5)

    # compare against the pure-JAX reference
    ref_f, ref_d = reference_forward(x, params)
    assert jnp.max(jnp.abs(focal - ref_f)) < 1e-4
    assert jnp.max(jnp.abs(distortion - ref_d)) < 1e-4
    print("KERNEL_OK")
</pallas_src>

<mosaic_0001>
module attributes {stable_mosaic.version = 11 : i64} {
  func.func @kernel(%arg0: i32, %arg1: memref<8x256xf32, #tpu.memory_space<vmem>>, %arg2: memref<2x8xf32, #tpu.memory_space<vmem>>, %arg3: memref<8x64xf32, #tpu.memory_space<vmem>>, %arg4: memref<1x64xf32, #tpu.memory_space<vmem>>, %arg5: memref<64x128xf32, #tpu.memory_space<vmem>>, %arg6: memref<1x128xf32, #tpu.memory_space<vmem>>, %arg7: memref<1x128xf32, #tpu.memory_space<vmem>>, %arg8: memref<1x128xf32, #tpu.memory_space<vmem>>, %arg9: memref<32x32xf32, #tpu.memory_space<vmem>>, %arg10: memref<1x32xf32, #tpu.memory_space<vmem>>, %arg11: memref<32x32xf32, #tpu.memory_space<vmem>>, %arg12: memref<1x32xf32, #tpu.memory_space<vmem>>, %arg13: memref<2x128xf32, #tpu.memory_space<vmem>>, %arg14: memref<8x1xf32, #tpu.memory_space<vmem>>) attributes {dimension_semantics = [#tpu.dimension_semantics<arbitrary>], iteration_bounds = array<i64: 1>, scalar_prefetch = 0 : i64, scratch_operands = 1 : i64, tpu.core_type = #tpu.core_type<tc>, window_params = [{transform_indices = @transform_0, window_bounds = array<i64: 8, 256>}, {pipeline_mode = #tpu.pipeline_mode<synchronous>, transform_indices = @transform_1, window_bounds = array<i64: 2, 8>}, {pipeline_mode = #tpu.pipeline_mode<synchronous>, transform_indices = @transform_2, window_bounds = array<i64: 8, 64>}, {pipeline_mode = #tpu.pipeline_mode<synchronous>, transform_indices = @transform_3, window_bounds = array<i64: 1, 64>}, {pipeline_mode = #tpu.pipeline_mode<synchronous>, transform_indices = @transform_4, window_bounds = array<i64: 64, 128>}, {pipeline_mode = #tpu.pipeline_mode<synchronous>, transform_indices = @transform_5, window_bounds = array<i64: 1, 128>}, {pipeline_mode = #tpu.pipeline_mode<synchronous>, transform_indices = @transform_6, window_bounds = array<i64: 1, 128>}, {pipeline_mode = #tpu.pipeline_mode<synchronous>, transform_indices = @transform_7, window_bounds = array<i64: 1, 128>}, {pipeline_mode = #tpu.pipeline_mode<synchronous>, transform_indices = @transform_8, window_bounds = array<i64: 32, 32>}, {pipeline_mode = #tpu.pipeline_mode<synchronous>, transform_indices = @transform_9, window_bounds = array<i64: 1, 32>}, {pipeline_mode = #tpu.pipeline_mode<synchronous>, transform_indices = @transform_10, window_bounds = array<i64: 32, 32>}, {pipeline_mode = #tpu.pipeline_mode<synchronous>, transform_indices = @transform_11, window_bounds = array<i64: 1, 32>}, {pipeline_mode = #tpu.pipeline_mode<synchronous>, transform_indices = @transform_12, window_bounds = array<i64: 2, 128>}]} {
    %c0_i32 = arith.constant 0 : i32
    %0 = arith.cmpi eq, %arg0, %c0_i32 : i32
    %1 = arith.extui %0 : i1 to i32
    %c0_i32_0 = arith.constant 0 : i32
    %2 = arith.cmpi ne, %1, %c0_i32_0 : i32
    scf.if %2 {
      %cst_8 = arith.constant 0.000000e+00 : f32
      %12 = vector.broadcast %cst_8 : f32 to vector<8x1xf32>
      %c0_9 = arith.constant 0 : index
      %c0_10 = arith.constant 0 : index
      %13 = vector.load %arg14[%c0_9, %c0_10] : memref<8x1xf32, #tpu.memory_space<vmem>>, vector<8x1xf32>
      tpu.vector_store %arg14[%c0_9, %c0_10], %12 {strides = array<i32>} : memref<8x1xf32, #tpu.memory_space<vmem>>, vector<8x1xf32>,
    } else {
    }
    %c0 = arith.constant 0 : index
    %c0_1 = arith.constant 0 : index
    %3 = vector.load %arg1[%c0, %c0_1] : memref<8x256xf32, #tpu.memory_space<vmem>>, vector<8x256xf32>
    %c0_2 = arith.constant 0 : index
    %c0_3 = arith.constant 0 : index
    %4 = vector.load %arg14[%c0_2, %c0_3] : memref<8x1xf32, #tpu.memory_space<vmem>>, vector<8x1xf32>
    %cst = arith.constant dense<0.000000e+00> : vector<8xf32>
    %5 = vector.multi_reduction <add>, %3, %cst [1] : vector<8x256xf32> to vector<8xf32>
    %6 = vector.shape_cast %5 : vector<8xf32> to vector<8x1xf32>
    %7 = arith.addf %4, %6 : vector<8x1xf32>
    %c0_4 = arith.constant 0 : index
    %c0_5 = arith.constant 0 : index
    %8 = vector.load %arg14[%c0_4, %c0_5] : memref<8x1xf32, #tpu.memory_space<vmem>>, vector<8x1xf32>
    tpu.vector_store %arg14[%c0_4, %c0_5], %7 {strides = array<i32>} : memref<8x1xf32, #tpu.memory_space<vmem>>, vector<8x1xf32>,
    %c0_i32_6 = arith.constant 0 : i32
    %9 = arith.cmpi eq, %arg0, %c0_i32_6 : i32
    %10 = arith.extui %9 : i1 to i32
    %c0_i32_7 = arith.constant 0 : i32
    %11 = arith.cmpi ne, %10, %c0_i32_7 : i32
    scf.if %11 {
      %c0_8 = arith.constant 0 : index
      %c0_9 = arith.constant 0 : index
      %12 = vector.load %arg2[%c0_8, %c0_9] : memref<2x8xf32, #tpu.memory_space<vmem>>, vector<2x8xf32>
      %c0_10 = arith.constant 0 : index
      %c0_11 = arith.constant 0 : index
      %13 = vector.load %arg14[%c0_10, %c0_11] : memref<8x1xf32, #tpu.memory_space<vmem>>, vector<8x1xf32>
      %c0_12 = arith.constant 0 : index
      %c0_13 = arith.constant 0 : index
      %14 = vector.load %arg3[%c0_12, %c0_13] : memref<8x64xf32, #tpu.memory_space<vmem>>, vector<8x64xf32>
      %15 = vector.broadcast %13 : vector<8x1xf32> to vector<8x64xf32>
      %16 = arith.mulf %15, %14 : vector<8x64xf32>
      %cst_14 = arith.constant dense<0.000000e+00> : vector<2x64xf32>
      %17 = tpu.matmul %12, %16, %cst_14 {dimension_numbers = #tpu.dot_dimension_numbers<[1], [0], [0], [1], [0, 0, 1, 1], [], []>} : vector<2x8xf32>, vector<8x64xf32>, vector<2x64xf32> -> vector<2x64xf32>
      %c0_15 = arith.constant 0 : index
      %c0_16 = arith.constant 0 : index
      %18 = vector.load %arg4[%c0_15, %c0_16] : memref<1x64xf32, #tpu.memory_space<vmem>>, vector<1x64xf32>
      %19 = vector.broadcast %18 : vector<1x64xf32> to vector<2x64xf32>
      %20 = arith.addf %17, %19 : vector<2x64xf32>
      %c0_17 = arith.constant 0 : index
      %c0_18 = arith.constant 0 : index
      %21 = vector.load %arg5[%c0_17, %c0_18] : memref<64x128xf32, #tpu.memory_space<vmem>>, vector<64x128xf32>
      %cst_19 = arith.constant dense<0.000000e+00> : vector<2x128xf32>
      %22 = tpu.matmul %20, %21, %cst_19 {dimension_numbers = #tpu.dot_dimension_numbers<[1], [0], [0], [1], [0, 0, 1, 1], [], []>} : vector<2x64xf32>, vector<64x128xf32>, vector<2x128xf32> -> vector<2x128xf32>
      %c0_20 = arith.constant 0 : index
      %c0_21 = arith.constant 0 : index
      %23 = vector.load %arg6[%c0_20, %c0_21] : memref<1x128xf32, #tpu.memory_space<vmem>>, vector<1x128xf32>
      %24 = vector.broadcast %23 : vector<1x128xf32> to vector<2x128xf32>
      %25 = arith.addf %22, %24 : vector<2x128xf32>
      %cst_22 = arith.constant dense<0.000000e+00> : vector<128xf32>
      %26 = vector.multi_reduction <add>, %25, %cst_22 [0] : vector<2x128xf32> to vector<128xf32>
      %27 = vector.shape_cast %26 : vector<128xf32> to vector<1x128xf32>
      %cst_23 = arith.constant 5.000000e-01 : f32
      %28 = vector.broadcast %cst_23 : f32 to vector<1x128xf32>
      %29 = arith.mulf %27, %28 : vector<1x128xf32>
      %30 = vector.broadcast %29 : vector<1x128xf32> to vector<2x128xf32>
      %31 = arith.subf %25, %30 : vector<2x128xf32>
      %32 = arith.mulf %31, %31 : vector<2x128xf32>
      %cst_24 = arith.constant dense<0.000000e+00> : vector<128xf32>
      %33 = vector.multi_reduction <add>, %32, %cst_24 [0] : vector<2x128xf32> to vector<128xf32>
      %34 = vector.shape_cast %33 : vector<128xf32> to vector<1x128xf32>
      %cst_25 = arith.constant 5.000000e-01 : f32
      %35 = vector.broadcast %cst_25 : f32 to vector<1x128xf32>
      %36 = arith.mulf %34, %35 : vector<1x128xf32>
      %cst_26 = arith.constant 9.99999974E-6 : f32
      %37 = vector.broadcast %cst_26 : f32 to vector<1x128xf32>
      %38 = arith.addf %36, %37 : vector<1x128xf32>
      %39 = math.rsqrt %38 : vector<1x128xf32>
      %40 = vector.broadcast %39 : vector<1x128xf32> to vector<2x128xf32>
      %41 = arith.mulf %31, %40 : vector<2x128xf32>
      %c0_27 = arith.constant 0 : index
      %c0_28 = arith.constant 0 : index
      %42 = vector.load %arg7[%c0_27, %c0_28] : memref<1x128xf32, #tpu.memory_space<vmem>>, vector<1x128xf32>
      %43 = vector.broadcast %42 : vector<1x128xf32> to vector<2x128xf32>
      %44 = arith.mulf %41, %43 : vector<2x128xf32>
      %c0_29 = arith.constant 0 : index
      %c0_30 = arith.constant 0 : index
      %45 = vector.load %arg8[%c0_29, %c0_30] : memref<1x128xf32, #tpu.memory_space<vmem>>, vector<1x128xf32>
      %46 = vector.broadcast %45 : vector<1x128xf32> to vector<2x128xf32>
      %47 = arith.addf %44, %46 : vector<2x128xf32>
      %cst_31 = arith.constant 0.000000e+00 : f32
      %48 = vector.broadcast %cst_31 : f32 to vector<2x128xf32>
      %49 = arith.maximumf %47, %48 : vector<2x128xf32>
      %50 = vector.extract_strided_slice %49 {offsets = [0, 0], sizes = [2, 32], strides = [1, 1]} : vector<2x128xf32> to vector<2x32xf32>
      %c0_32 = arith.constant 0 : index
      %c0_33 = arith.constant 0 : index
      %51 = vector.load %arg9[%c0_32, %c0_33] : memref<32x32xf32, #tpu.memory_space<vmem>>, vector<32x32xf32>
      %cst_34 = arith.constant dense<0.000000e+00> : vector<2x32xf32>
      %52 = tpu.matmul %50, %51, %cst_34 {dimension_numbers = #tpu.dot_dimension_numbers<[1], [0], [0], [1], [0, 0, 1, 1], [], []>} : vector<2x32xf32>, vector<32x32xf32>, vector<2x32xf32> -> vector<2x32xf32>
      %c0_35 = arith.constant 0 : index
      %c0_36 = arith.constant 0 : index
      %53 = vector.load %arg10[%c0_35, %c0_36] : memref<1x32xf32, #tpu.memory_space<vmem>>, vector<1x32xf32>
      %54 = vector.broadcast %53 : vector<1x32xf32> to vector<2x32xf32>
      %55 = arith.addf %52, %54 : vector<2x32xf32>
      %56 = vector.extract_strided_slice %49 {offsets = [0, 32], sizes = [2, 32], strides = [1, 1]} : vector<2x128xf32> to vector<2x32xf32>
      %c0_37 = arith.constant 0 : index
      %c0_38 = arith.constant 0 : index
      %57 = vector.load %arg11[%c0_37, %c0_38] : memref<32x32xf32, #tpu.memory_space<vmem>>, vector<32x32xf32>
      %cst_39 = arith.constant dense<0.000000e+00> : vector<2x32xf32>
      %58 = tpu.matmul %56, %57, %cst_39 {dimension_numbers = #tpu.dot_dimension_numbers<[1], [0], [0], [1], [0, 0, 1, 1], [], []>} : vector<2x32xf32>, vector<32x32xf32>, vector<2x32xf32> -> vector<2x32xf32>
      %c0_40 = arith.constant 0 : index
      %c0_41 = arith.constant 0 : index
      %59 = vector.load %arg12[%c0_40, %c0_41] : memref<1x32xf32, #tpu.memory_space<vmem>>, vector<1x32xf32>
      %60 = vector.broadcast %59 : vector<1x32xf32> to vector<2x32xf32>
      %61 = arith.addf %58, %60 : vector<2x32xf32>
      %cst_42 = arith.constant dense<0xFF800000> : vector<2xf32>
      %62 = vector.multi_reduction <maximumf>, %55, %cst_42 [1] : vector<2x32xf32> to vector<2xf32>
      %63 = vector.shape_cast %62 : vector<2xf32> to vector<2x1xf32>
      %64 = vector.broadcast %63 : vector<2x1xf32> to vector<2x32xf32>
      %65 = arith.subf %55, %64 : vector<2x32xf32>
      %66 = math.exp %65 : vector<2x32xf32>
      %cst_43 = arith.constant dense<0.000000e+00> : vector<2xf32>
      %67 = vector.multi_reduction <add>, %66, %cst_43 [1] : vector<2x32xf32> to vector<2xf32>
      %68 = vector.shape_cast %67 : vector<2xf32> to vector<2x1xf32>
      %69 = vector.broadcast %68 : vector<2x1xf32> to vector<2x32xf32>
      %70 = arith.divf %66, %69 : vector<2x32xf32>
      %cst_44 = arith.constant dense<0xFF800000> : vector<2xf32>
      %71 = vector.multi_reduction <maximumf>, %61, %cst_44 [1] : vector<2x32xf32> to vector<2xf32>
      %72 = vector.shape_cast %71 : vector<2xf32> to vector<2x1xf32>
      %73 = vector.broadcast %72 : vector<2x1xf32> to vector<2x32xf32>
      %74 = arith.subf %61, %73 : vector<2x32xf32>
      %75 = math.exp %74 : vector<2x32xf32>
      %cst_45 = arith.constant dense<0.000000e+00> : vector<2xf32>
      %76 = vector.multi_reduction <add>, %75, %cst_45 [1] : vector<2x32xf32> to vector<2xf32>
      %77 = vector.shape_cast %76 : vector<2xf32> to vector<2x1xf32>
      %78 = vector.broadcast %77 : vector<2x1xf32> to vector<2x32xf32>
      %79 = arith.divf %75, %78 : vector<2x32xf32>
      %80 = tpu.concatenate %70, %79 in 1 : vector<2x32xf32>, vector<2x32xf32> -> vector<2x64xf32>
      %cst_46 = arith.constant 0.000000e+00 : f32
      %81 = vector.broadcast %cst_46 : f32 to vector<2x64xf32>
      %82 = tpu.concatenate %80, %81 in 1 : vector<2x64xf32>, vector<2x64xf32> -> vector<2x128xf32>
      %c0_47 = arith.constant 0 : index
      %c0_48 = arith.constant 0 : index
      %83 = vector.load %arg13[%c0_47, %c0_48] : memref<2x128xf32, #tpu.memory_space<vmem>>, vector<2x128xf32>
      tpu.vector_store %arg13[%c0_47, %c0_48], %82 {strides = array<i32>} : memref<2x128xf32, #tpu.memory_space<vmem>>, vector<2x128xf32>,
    } else {
    }
    return
  }
  func.func @transform_0(%arg0: i32) -> (i32, i32) {
    %c0_i32 = arith.constant 0 : i32
    %c0_i32_0 = arith.constant 0 : i32
    return %c0_i32, %arg0 : i32, i32
  }
  func.func @transform_1(%arg0: i32) -> (i32, i32) {
    %c0_i32 = arith.constant 0 : i32
    %c0_i32_0 = arith.constant 0 : i32
    %c0_i32_1 = arith.constant 0 : i32
    return %c0_i32, %c0_i32_0 : i32, i32
  }
  func.func @transform_2(%arg0: i32) -> (i32, i32) {
    %c0_i32 = arith.constant 0 : i32
    %c0_i32_0 = arith.constant 0 : i32
    %c0_i32_1 = arith.constant 0 : i32
    return %c0_i32, %c0_i32_0 : i32, i32
  }
  func.func @transform_3(%arg0: i32) -> (i32, i32) {
    %c0_i32 = arith.constant 0 : i32
    %c0_i32_0 = arith.constant 0 : i32
    %c0_i32_1 = arith.constant 0 : i32
    return %c0_i32, %c0_i32_0 : i32, i32
  }
  func.func @transform_4(%arg0: i32) -> (i32, i32) {
    %c0_i32 = arith.constant 0 : i32
    %c0_i32_0 = arith.constant 0 : i32
    %c0_i32_1 = arith.constant 0 : i32
    return %c0_i32, %c0_i32_0 : i32, i32
  }
  func.func @transform_5(%arg0: i32) -> (i32, i32) {
    %c0_i32 = arith.constant 0 : i32
    %c0_i32_0 = arith.constant 0 : i32
    %c0_i32_1 = arith.constant 0 : i32
    return %c0_i32, %c0_i32_0 : i32, i32
  }
  func.func @transform_6(%arg0: i32) -> (i32, i32) {
    %c0_i32 = arith.constant 0 : i32
    %c0_i32_0 = arith.constant 0 : i32
    %c0_i32_1 = arith.constant 0 : i32
    return %c0_i32, %c0_i32_0 : i32, i32
  }
  func.func @transform_7(%arg0: i32) -> (i32, i32) {
    %c0_i32 = arith.constant 0 : i32
    %c0_i32_0 = arith.constant 0 : i32
    %c0_i32_1 = arith.constant 0 : i32
    return %c0_i32, %c0_i32_0 : i32, i32
  }
  func.func @transform_8(%arg0: i32) -> (i32, i32) {
    %c0_i32 = arith.constant 0 : i32
    %c0_i32_0 = arith.constant 0 : i32
    %c0_i32_1 = arith.constant 0 : i32
    return %c0_i32, %c0_i32_0 : i32, i32
  }
  func.func @transform_9(%arg0: i32) -> (i32, i32) {
    %c0_i32 = arith.constant 0 : i32
    %c0_i32_0 = arith.constant 0 : i32
    %c0_i32_1 = arith.constant 0 : i32
    return %c0_i32, %c0_i32_0 : i32, i32
  }
  func.func @transform_10(%arg0: i32) -> (i32, i32) {
    %c0_i32 = arith.constant 0 : i32
    %c0_i32_0 = arith.constant 0 : i32
    %c0_i32_1 = arith.constant 0 : i32
    return %c0_i32, %c0_i32_0 : i32, i32
  }
  func.func @transform_11(%arg0: i32) -> (i32, i32) {
    %c0_i32 = arith.constant 0 : i32
    %c0_i32_0 = arith.constant 0 : i32
    %c0_i32_1 = arith.constant 0 : i32
    return %c0_i32, %c0_i32_0 : i32, i32
  }
  func.func @transform_12(%arg0: i32) -> (i32, i32) {
    %c0_i32 = arith.constant 0 : i32
    %c0_i32_0 = arith.constant 0 : i32
    %c0_i32_1 = arith.constant 0 : i32
    return %c0_i32, %c0_i32_0 : i32, i32
  }
}

module attributes {stable_mosaic.version = 11 : i64} {
  func.func @kernel(%arg0: i32, %arg1: memref<8x256xf32, #tpu.memory_space<vmem>>, %arg2: memref<2x8xf32, #tpu.memory_space<vmem>>, %arg3: memref<8x64xf32, #tpu.memory_space<vmem>>, %arg4: memref<1x64xf32, #tpu.memory_space<vmem>>, %arg5: memref<64x128xf32, #tpu.memory_space<vmem>>, %arg6: memref<1x128xf32, #tpu.memory_space<vmem>>, %arg7: memref<1x128xf32, #tpu.memory_space<vmem>>, %arg8: memref<1x128xf32, #tpu.memory_space<vmem>>, %arg9: memref<32x32xf32, #tpu.memory_space<vmem>>, %arg10: memref<1x32xf32, #tpu.memory_space<vmem>>, %arg11: memref<32x32xf32, #tpu.memory_space<vmem>>, %arg12: memref<1x32xf32, #tpu.memory_space<vmem>>, %arg13: memref<2x128xf32, #tpu.memory_space<vmem>>, %arg14: memref<8x1xf32, #tpu.memory_space<vmem>>) attributes {dimension_semantics = [#tpu.dimension_semantics<arbitrary>], iteration_bounds = array<i64: 1>, scalar_prefetch = 0 : i64, scratch_operands = 1 : i64, tpu.core_type = #tpu.core_type<tc>, window_params = [{transform_indices = @transform_0, window_bounds = array<i64: 8, 256>}, {pipeline_mode = #tpu.pipeline_mode<synchronous>, transform_indices = @transform_1, window_bounds = array<i64: 2, 8>}, {pipeline_mode = #tpu.pipeline_mode<synchronous>, transform_indices = @transform_2, window_bounds = array<i64: 8, 64>}, {pipeline_mode = #tpu.pipeline_mode<synchronous>, transform_indices = @transform_3, window_bounds = array<i64: 1, 64>}, {pipeline_mode = #tpu.pipeline_mode<synchronous>, transform_indices = @transform_4, window_bounds = array<i64: 64, 128>}, {pipeline_mode = #tpu.pipeline_mode<synchronous>, transform_indices = @transform_5, window_bounds = array<i64: 1, 128>}, {pipeline_mode = #tpu.pipeline_mode<synchronous>, transform_indices = @transform_6, window_bounds = array<i64: 1, 128>}, {pipeline_mode = #tpu.pipeline_mode<synchronous>, transform_indices = @transform_7, window_bounds = array<i64: 1, 128>}, {pipeline_mode = #tpu.pipeline_mode<synchronous>, transform_indices = @transform_8, window_bounds = array<i64: 32, 32>}, {pipeline_mode = #tpu.pipeline_mode<synchronous>, transform_indices = @transform_9, window_bounds = array<i64: 1, 32>}, {pipeline_mode = #tpu.pipeline_mode<synchronous>, transform_indices = @transform_10, window_bounds = array<i64: 32, 32>}, {pipeline_mode = #tpu.pipeline_mode<synchronous>, transform_indices = @transform_11, window_bounds = array<i64: 1, 32>}, {pipeline_mode = #tpu.pipeline_mode<synchronous>, transform_indices = @transform_12, window_bounds = array<i64: 2, 128>}]} {
    %c0_i32 = arith.constant 0 : i32
    %0 = arith.cmpi eq, %arg0, %c0_i32 : i32
    %1 = arith.extui %0 : i1 to i32
    %c0_i32_0 = arith.constant 0 : i32
    %2 = arith.cmpi ne, %1, %c0_i32_0 : i32
    scf.if %2 {
      %cst_8 = arith.constant 0.000000e+00 : f32
      %12 = vector.broadcast %cst_8 : f32 to vector<8x1xf32>
      %c0_9 = arith.constant 0 : index
      %c0_10 = arith.constant 0 : index
      %13 = vector.load %arg14[%c0_9, %c0_10] : memref<8x1xf32, #tpu.memory_space<vmem>>, vector<8x1xf32>
      tpu.vector_store %arg14[%c0_9, %c0_10], %12 {strides = array<i32>} : memref<8x1xf32, #tpu.memory_space<vmem>>, vector<8x1xf32>,
    } else {
    }
    %c0 = arith.constant 0 : index
    %c0_1 = arith.constant 0 : index
    %3 = vector.load %arg1[%c0, %c0_1] : memref<8x256xf32, #tpu.memory_space<vmem>>, vector<8x256xf32>
    %c0_2 = arith.constant 0 : index
    %c0_3 = arith.constant 0 : index
    %4 = vector.load %arg14[%c0_2, %c0_3] : memref<8x1xf32, #tpu.memory_space<vmem>>, vector<8x1xf32>
    %cst = arith.constant dense<0.000000e+00> : vector<8xf32>
    %5 = vector.multi_reduction <add>, %3, %cst [1] : vector<8x256xf32> to vector<8xf32>
    %6 = vector.shape_cast %5 : vector<8xf32> to vector<8x1xf32>
    %7 = arith.addf %4, %6 : vector<8x1xf32>
    %c0_4 = arith.constant 0 : index
    %c0_5 = arith.constant 0 : index
    %8 = vector.load %arg14[%c0_4, %c0_5] : memref<8x1xf32, #tpu.memory_space<vmem>>, vector<8x1xf32>
    tpu.vector_store %arg14[%c0_4, %c0_5], %7 {strides = array<i32>} : memref<8x1xf32, #tpu.memory_space<vmem>>, vector<8x1xf32>,
    %c0_i32_6 = arith.constant 0 : i32
    %9 = arith.cmpi eq, %arg0, %c0_i32_6 : i32
    %10 = arith.extui %9 : i1 to i32
    %c0_i32_7 = arith.constant 0 : i32
    %11 = arith.cmpi ne, %10, %c0_i32_7 : i32
    scf.if %11 {
      %c0_8 = arith.constant 0 : index
      %c0_9 = arith.constant 0 : index
      %12 = vector.load %arg2[%c0_8, %c0_9] : memref<2x8xf32, #tpu.memory_space<vmem>>, vector<2x8xf32>
      %c0_10 = arith.constant 0 : index
      %c0_11 = arith.constant 0 : index
      %13 = vector.load %arg14[%c0_10, %c0_11] : memref<8x1xf32, #tpu.memory_space<vmem>>, vector<8x1xf32>
      %c0_12 = arith.constant 0 : index
      %c0_13 = arith.constant 0 : index
      %14 = vector.load %arg3[%c0_12, %c0_13] : memref<8x64xf32, #tpu.memory_space<vmem>>, vector<8x64xf32>
      %15 = vector.broadcast %13 : vector<8x1xf32> to vector<8x64xf32>
      %16 = arith.mulf %15, %14 : vector<8x64xf32>
      %cst_14 = arith.constant dense<0.000000e+00> : vector<2x64xf32>
      %17 = tpu.matmul %12, %16, %cst_14 {dimension_numbers = #tpu.dot_dimension_numbers<[1], [0], [0], [1], [0, 0, 1, 1], [], []>} : vector<2x8xf32>, vector<8x64xf32>, vector<2x64xf32> -> vector<2x64xf32>
      %c0_15 = arith.constant 0 : index
      %c0_16 = arith.constant 0 : index
      %18 = vector.load %arg4[%c0_15, %c0_16] : memref<1x64xf32, #tpu.memory_space<vmem>>, vector<1x64xf32>
      %19 = vector.broadcast %18 : vector<1x64xf32> to vector<2x64xf32>
      %20 = arith.addf %17, %19 : vector<2x64xf32>
      %c0_17 = arith.constant 0 : index
      %c0_18 = arith.constant 0 : index
      %21 = vector.load %arg5[%c0_17, %c0_18] : memref<64x128xf32, #tpu.memory_space<vmem>>, vector<64x128xf32>
      %cst_19 = arith.constant dense<0.000000e+00> : vector<2x128xf32>
      %22 = tpu.matmul %20, %21, %cst_19 {dimension_numbers = #tpu.dot_dimension_numbers<[1], [0], [0], [1], [0, 0, 1, 1], [], []>} : vector<2x64xf32>, vector<64x128xf32>, vector<2x128xf32> -> vector<2x128xf32>
      %c0_20 = arith.constant 0 : index
      %c0_21 = arith.constant 0 : index
      %23 = vector.load %arg6[%c0_20, %c0_21] : memref<1x128xf32, #tpu.memory_space<vmem>>, vector<1x128xf32>
      %24 = vector.broadcast %23 : vector<1x128xf32> to vector<2x128xf32>
      %25 = arith.addf %22, %24 : vector<2x128xf32>
      %cst_22 = arith.constant dense<0.000000e+00> : vector<128xf32>
      %26 = vector.multi_reduction <add>, %25, %cst_22 [0] : vector<2x128xf32> to vector<128xf32>
      %27 = vector.shape_cast %26 : vector<128xf32> to vector<1x128xf32>
      %cst_23 = arith.constant 5.000000e-01 : f32
      %28 = vector.broadcast %cst_23 : f32 to vector<1x128xf32>
      %29 = arith.mulf %27, %28 : vector<1x128xf32>
      %30 = vector.broadcast %29 : vector<1x128xf32> to vector<2x128xf32>
      %31 = arith.subf %25, %30 : vector<2x128xf32>
      %32 = arith.mulf %31, %31 : vector<2x128xf32>
      %cst_24 = arith.constant dense<0.000000e+00> : vector<128xf32>
      %33 = vector.multi_reduction <add>, %32, %cst_24 [0] : vector<2x128xf32> to vector<128xf32>
      %34 = vector.shape_cast %33 : vector<128xf32> to vector<1x128xf32>
      %cst_25 = arith.constant 5.000000e-01 : f32
      %35 = vector.broadcast %cst_25 : f32 to vector<1x128xf32>
      %36 = arith.mulf %34, %35 : vector<1x128xf32>
      %cst_26 = arith.constant 9.99999974E-6 : f32
      %37 = vector.broadcast %cst_26 : f32 to vector<1x128xf32>
      %38 = arith.addf %36, %37 : vector<1x128xf32>
      %39 = math.rsqrt %38 : vector<1x128xf32>
      %40 = vector.broadcast %39 : vector<1x128xf32> to vector<2x128xf32>
      %41 = arith.mulf %31, %40 : vector<2x128xf32>
      %c0_27 = arith.constant 0 : index
      %c0_28 = arith.constant 0 : index
      %42 = vector.load %arg7[%c0_27, %c0_28] : memref<1x128xf32, #tpu.memory_space<vmem>>, vector<1x128xf32>
      %43 = vector.broadcast %42 : vector<1x128xf32> to vector<2x128xf32>
      %44 = arith.mulf %41, %43 : vector<2x128xf32>
      %c0_29 = arith.constant 0 : index
      %c0_30 = arith.constant 0 : index
      %45 = vector.load %arg8[%c0_29, %c0_30] : memref<1x128xf32, #tpu.memory_space<vmem>>, vector<1x128xf32>
      %46 = vector.broadcast %45 : vector<1x128xf32> to vector<2x128xf32>
      %47 = arith.addf %44, %46 : vector<2x128xf32>
      %cst_31 = arith.constant 0.000000e+00 : f32
      %48 = vector.broadcast %cst_31 : f32 to vector<2x128xf32>
      %49 = arith.maximumf %47, %48 : vector<2x128xf32>
      %50 = vector.extract_strided_slice %49 {offsets = [0, 0], sizes = [2, 32], strides = [1, 1]} : vector<2x128xf32> to vector<2x32xf32>
      %c0_32 = arith.constant 0 : index
      %c0_33 = arith.constant 0 : index
      %51 = vector.load %arg9[%c0_32, %c0_33] : memref<32x32xf32, #tpu.memory_space<vmem>>, vector<32x32xf32>
      %cst_34 = arith.constant dense<0.000000e+00> : vector<2x32xf32>
      %52 = tpu.matmul %50, %51, %cst_34 {dimension_numbers = #tpu.dot_dimension_numbers<[1], [0], [0], [1], [0, 0, 1, 1], [], []>} : vector<2x32xf32>, vector<32x32xf32>, vector<2x32xf32> -> vector<2x32xf32>
      %c0_35 = arith.constant 0 : index
      %c0_36 = arith.constant 0 : index
      %53 = vector.load %arg10[%c0_35, %c0_36] : memref<1x32xf32, #tpu.memory_space<vmem>>, vector<1x32xf32>
      %54 = vector.broadcast %53 : vector<1x32xf32> to vector<2x32xf32>
      %55 = arith.addf %52, %54 : vector<2x32xf32>
      %56 = vector.extract_strided_slice %49 {offsets = [0, 32], sizes = [2, 32], strides = [1, 1]} : vector<2x128xf32> to vector<2x32xf32>
      %c0_37 = arith.constant 0 : index
      %c0_38 = arith.constant 0 : index
      %57 = vector.load %arg11[%c0_37, %c0_38] : memref<32x32xf32, #tpu.memory_space<vmem>>, vector<32x32xf32>
      %cst_39 = arith.constant dense<0.000000e+00> : vector<2x32xf32>
      %58 = tpu.matmul %56, %57, %cst_39 {dimension_numbers = #tpu.dot_dimension_numbers<[1], [0], [0], [1], [0, 0, 1, 1], [], []>} : vector<2x32xf32>, vector<32x32xf32>, vector<2x32xf32> -> vector<2x32xf32>
      %c0_40 = arith.constant 0 : index
      %c0_41 = arith.constant 0 : index
      %59 = vector.load %arg12[%c0_40, %c0_41] : memref<1x32xf32, #tpu.memory_space<vmem>>, vector<1x32xf32>
      %60 = vector.broadcast %59 : vector<1x32xf32> to vector<2x32xf32>
      %61 = arith.addf %58, %60 : vector<2x32xf32>
      %cst_42 = arith.constant dense<0xFF800000> : vector<2xf32>
      %62 = vector.multi_reduction <maximumf>, %55, %cst_42 [1] : vector<2x32xf32> to vector<2xf32>
      %63 = vector.shape_cast %62 : vector<2xf32> to vector<2x1xf32>
      %64 = vector.broadcast %63 : vector<2x1xf32> to vector<2x32xf32>
      %65 = arith.subf %55, %64 : vector<2x32xf32>
      %66 = math.exp %65 : vector<2x32xf32>
      %cst_43 = arith.constant dense<0.000000e+00> : vector<2xf32>
      %67 = vector.multi_reduction <add>, %66, %cst_43 [1] : vector<2x32xf32> to vector<2xf32>
      %68 = vector.shape_cast %67 : vector<2xf32> to vector<2x1xf32>
      %69 = vector.broadcast %68 : vector<2x1xf32> to vector<2x32xf32>
      %70 = arith.divf %66, %69 : vector<2x32xf32>
      %cst_44 = arith.constant dense<0xFF800000> : vector<2xf32>
      %71 = vector.multi_reduction <maximumf>, %61, %cst_44 [1] : vector<2x32xf32> to vector<2xf32>
      %72 = vector.shape_cast %71 : vector<2xf32> to vector<2x1xf32>
      %73 = vector.broadcast %72 : vector<2x1xf32> to vector<2x32xf32>
      %74 = arith.subf %61, %73 : vector<2x32xf32>
      %75 = math.exp %74 : vector<2x32xf32>
      %cst_45 = arith.constant dense<0.000000e+00> : vector<2xf32>
      %76 = vector.multi_reduction <add>, %75, %cst_45 [1] : vector<2x32xf32> to vector<2xf32>
      %77 = vector.shape_cast %76 : vector<2xf32> to vector<2x1xf32>
      %78 = vector.broadcast %77 : vector<2x1xf32> to vector<2x32xf32>
      %79 = arith.divf %75, %78 : vector<2x32xf32>
      %80 = tpu.concatenate %70, %79 in 1 : vector<2x32xf32>, vector<2x32xf32> -> vector<2x64xf32>
      %cst_46 = arith.constant 0.000000e+00 : f32
      %81 = vector.broadcast %cst_46 : f32 to vector<2x64xf32>
      %82 = tpu.concatenate %80, %81 in 1 : vector<2x64xf32>, vector<2x64xf32> -> vector<2x128xf32>
      %c0_47 = arith.constant 0 : index
      %c0_48 = arith.constant 0 : index
      %83 = vector.load %arg13[%c0_47, %c0_48] : memref<2x128xf32, #tpu.memory_space<vmem>>, vector<2x128xf32>
      tpu.vector_store %arg13[%c0_47, %c0_48], %82 {strides = array<i32>} : memref<2x128xf32, #tpu.memory_space<vmem>>, vector<2x128xf32>,
    } else {
    }
    return
  }
  func.func @transform_0(%arg0: i32) -> (i32, i32) {
    %c0_i32 = arith.constant 0 : i32
    %c0_i32_0 = arith.constant 0 : i32
    return %c0_i32, %arg0 : i32, i32
  }
  func.func @transform_1(%arg0: i32) -> (i32, i32) {
    %c0_i32 = arith.constant 0 : i32
    %c0_i32_0 = arith.constant 0 : i32
    %c0_i32_1 = arith.constant 0 : i32
    return %c0_i32, %c0_i32_0 : i32, i32
  }
  func.func @transform_2(%arg0: i32) -> (i32, i32) {
    %c0_i32 = arith.constant 0 : i32
    %c0_i32_0 = arith.constant 0 : i32
    %c0_i32_1 = arith.constant 0 : i32
    return %c0_i32, %c0_i32_0 : i32, i32
  }
  func.func @transform_3(%arg0: i32) -> (i32, i32) {
    %c0_i32 = arith.constant 0 : i32
    %c0_i32_0 = arith.constant 0 : i32
    %c0_i32_1 = arith.constant 0 : i32
    return %c0_i32, %c0_i32_0 : i32, i32
  }
  func.func @transform_4(%arg0: i32) -> (i32, i32) {
    %c0_i32 = arith.constant 0 : i32
    %c0_i32_0 = arith.constant 0 : i32
    %c0_i32_1 = arith.constant 0 : i32
    return %c0_i32, %c0_i32_0 : i32, i32
  }
  func.func @transform_5(%arg0: i32) -> (i32, i32) {
    %c0_i32 = arith.constant 0 : i32
    %c0_i32_0 = arith.constant 0 : i32
    %c0_i32_1 = arith.constant 0 : i32
    return %c0_i32, %c0_i32_0 : i32, i32
  }
  func.func @transform_6(%arg0: i32) -> (i32, i32) {
    %c0_i32 = arith.constant 0 : i32
    %c0_i32_0 = arith.constant 0 : i32
    %c0_i32_1 = arith.constant 0 : i32
    return %c0_i32, %c0_i32_0 : i32, i32
  }
  func.func @transform_7(%arg0: i32) -> (i32, i32) {
    %c0_i32 = arith.constant 0 : i32
    %c0_i32_0 = arith.constant 0 : i32
    %c0_i32_1 = arith.constant 0 : i32
    return %c0_i32, %c0_i32_0 : i32, i32
  }
  func.func @transform_8(%arg0: i32) -> (i32, i32) {
    %c0_i32 = arith.constant 0 : i32
    %c0_i32_0 = arith.constant 0 : i32
    %c0_i32_1 = arith.constant 0 : i32
    return %c0_i32, %c0_i32_0 : i32, i32
  }
  func.func @transform_9(%arg0: i32) -> (i32, i32) {
    %c0_i32 = arith.constant 0 : i32
    %c0_i32_0 = arith.constant 0 : i32
    %c0_i32_1 = arith.constant 0 : i32
    return %c0_i32, %c0_i32_0 : i32, i32
  }
  func.func @transform_10(%arg0: i32) -> (i32, i32) {
    %c0_i32 = arith.constant 0 : i32
    %c0_i32_0 = arith.constant 0 : i32
    %c0_i32_1 = arith.constant 0 : i32
    return %c0_i32, %c0_i32_0 : i32, i32
  }
  func.func @transform_11(%arg0: i32) -> (i32, i32) {
    %c0_i32 = arith.constant 0 : i32
    %c0_i32_0 = arith.constant 0 : i32
    %c0_i32_1 = arith.constant 0 : i32
    return %c0_i32, %c0_i32_0 : i32, i32
  }
  func.func @transform_12(%arg0: i32) -> (i32, i32) {
    %c0_i32 = arith.constant 0 : i32
    %c0_i32_0 = arith.constant 0 : i32
    %c0_i32_1 = arith.constant 0 : i32
    return %c0_i32, %c0_i32_0 : i32, i32
  }
}

</mosaic_0001>

<bundles_post_ra>
// kernel: tpu_custom_call.1
= control target key start
LH: loop header
LB: loop body
LE: loop exit
PB: predicated region body
PF: predicated region fallthrough
CT: control target
= control target key end

     0   :  { %17 = vsyncpa [#allocation4], 0  ;;  %s986_s0 = inlined_call_operand.hbm [shape: f32[8,256], index: 0, kind: input, shape index: {}]   ;;  %s987_s1 = inlined_call_operand.hbm [shape: f32[2,8], index: 1, kind: input, shape index: {}]   ;;  %s988_s2 = inlined_call_operand.hbm [shape: f32[8,64], index: 2, kind: input, shape index: {}]   ;;  %s989_s3 = inlined_call_operand.vmem [shape: f32[1,64], index: 3, kind: input, shape index: {}]   ;;  %s990_s4 = inlined_call_operand.hbm [shape: f32[64,128], index: 4, kind: input, shape index: {}]   ;;  %s991_s5 = inlined_call_operand.vmem [shape: f32[1,128], index: 5, kind: input, shape index: {}]   ;;  %s992_s6 = inlined_call_operand.vmem [shape: f32[1,128], index: 6, kind: input, shape index: {}]   ;;  %s993_s7 = inlined_call_operand.vmem [shape: f32[1,128], index: 7, kind: input, shape index: {}]   ;;  %s994_s8 = inlined_call_operand.hbm [shape: f32[32,32], index: 8, kind: input, shape index: {}]   ;;  %s995_s9 = inlined_call_operand.vmem [shape: f32[1,32], index: 9, kind: input, shape index: {}]   ;;  %s996_s10 = inlined_call_operand.hbm [shape: f32[32,32], index: 10, kind: input, shape index: {}]   ;;  %s997_s11 = inlined_call_operand.vmem [shape: f32[1,32], index: 11, kind: input, shape index: {}]   ;;  %s998_s12 = inlined_call_operand.hbm [shape: f32[2,128], index: 12, kind: output, shape index: {}]  }
   0x1   :  { %18 = vsyncpa [#allocation7], 0 }
   0x2   :  { %19 = vsyncpa [#allocation10], 0 }
   0x3   :  { %20 = vsyncpa [#allocation13], 0 }
   0x4   :  { %21 = vsyncpa [#allocation5], 0  ;;  %s824_s21 = smov [#allocation6]   ;;  %s825_s23 = smov [#allocation9]  }
   0x5   :  { %s38_s22 = sshll.u32 %s824_s21, 4  ;;  %s59_s24 = sshll.u32 %s825_s23, 4  ;;  %s39_s22 = int_to_ptr.vmem [resolvable:$true] %s38_s22  ;;  %s60_s24 = int_to_ptr.vmem [resolvable:$true] %s59_s24 }
   0x6   :  { %s682_s25 = scalar_lea.vmem %s39_s22, 32  ;;  %p687_p1 = scmp.lt.s32.totalorder %s39_s22, %s39_s22 }
   0x7   :  { %p683_p0 = scmp.ne.s32.totalorder %s39_s22, %s682_s25  ;;  %p688_p2 = scmp.lt.s32.totalorder %s682_s25, %s682_s25 }
   0x9   :  { %p689_p3 = por %p688_p2, %p687_p1 }
   0xb   :  { %p690_p4 = pnand %p689_p3, %p683_p0 }
   0xd   :  { %693 = shalt.err (!%p690_p4)
}
   0xe   :  { %41 = dma.hbm_to_vmem [thread:$0]  %s987_s1, 32, %s39_s22, [#allocation7]  }
   0xf   :  { %s702_s28 = scalar_lea.vmem %s60_s24, 1024  ;;  %p707_p6 = scmp.lt.s32.totalorder %s60_s24, %s60_s24 }
  0x10   :  { %p703_p5 = scmp.ne.s32.totalorder %s60_s24, %s702_s28  ;;  %p708_p7 = scmp.lt.s32.totalorder %s702_s28, %s702_s28 }
  0x12   :  { %p709_p8 = por %p708_p7, %p707_p6 }
  0x14   :  { %p710_p9 = pnand %p709_p8, %p703_p5 }
  0x16   :  { %713 = shalt.err (!%p710_p9)
}
  0x17   :  { %s826_s29 = smov 128   ;;  %s827_s30 = smov 8  }
  0x18   :  { %65 = dma.hbm_to_vmem [thread:$0]  %s990_s4, 1024, %s60_s24, [#allocation10], %s826_s29, %s826_s29, %s827_s30  }
  0x19   :  { %s828_s15 = smov [#allocation3]   ;;  %s829_s17 = smov [#allocation8]  }
  0x1a   :  { %s28_s16 = sshll.u32 %s828_s15, 4  ;;  %s48_s1 = sshll.u32 %s829_s17, 4  ;;  %s29_s16 = int_to_ptr.vmem [resolvable:$true] %s28_s16  ;;  %s49_s1 = int_to_ptr.vmem [resolvable:$true] %s48_s1 }
  0x1b   :  { %s722_s18 = scalar_lea.vmem %s29_s16, 256  ;;  %p727_p11 = scmp.lt.s32.totalorder %s29_s16, %s29_s16 }
  0x1c   :  { %p723_p10 = scmp.ne.s32.totalorder %s29_s16, %s722_s18  ;;  %p728_p12 = scmp.lt.s32.totalorder %s722_s18, %s722_s18 }
  0x1e   :  { %p729_p13 = por %p728_p12, %p727_p11 }
  0x20   :  { %p730_p0 = pnand %p729_p13, %p723_p10 }
  0x22   :  { %733 = shalt.err (!%p730_p0)
}
  0x23   :  { %31 = dma.hbm_to_vmem [thread:$0]  %s986_s0, 256, %s29_s16, [#allocation4]  }
  0x24   :  { %s742_s21 = scalar_lea.vmem %s49_s1, 128  ;;  %p747_p2 = scmp.lt.s32.totalorder %s49_s1, %s49_s1 }
  0x25   :  { %p743_p1 = scmp.ne.s32.totalorder %s49_s1, %s742_s21  ;;  %p748_p3 = scmp.lt.s32.totalorder %s742_s21, %s742_s21 }
  0x27   :  { %p749_p4 = por %p748_p3, %p747_p2 }
  0x29   :  { %p750_p5 = pnand %p749_p4, %p743_p1 }
  0x2b   :  { %753 = shalt.err (!%p750_p5)
}
  0x2c   :  { %51 = dma.hbm_to_vmem [thread:$0]  %s988_s2, 128, %s49_s1, [#allocation7]  }
  0x2d   :  { %s830_s23 = smov [#allocation11]   ;;  %s831_s25 = smov [#allocation12]  }
  0x2e   :  { %s77_s24 = sshll.u32 %s830_s23, 4  ;;  %s91_s26 = sshll.u32 %s831_s25, 4  ;;  %s78_s24 = int_to_ptr.vmem [resolvable:$true] %s77_s24  ;;  %s92_s26 = int_to_ptr.vmem [resolvable:$true] %s91_s26 }
  0x2f   :  { %s762_s27 = scalar_lea.vmem %s78_s24, 512  ;;  %p767_p7 = scmp.lt.s32.totalorder %s78_s24, %s78_s24 }
  0x30   :  { %p763_p6 = scmp.ne.s32.totalorder %s78_s24, %s762_s27  ;;  %p768_p8 = scmp.lt.s32.totalorder %s762_s27, %s762_s27 }
  0x32   :  { %p769_p9 = por %p768_p8, %p767_p7 }
  0x34   :  { %p770_p10 = pnand %p769_p9, %p763_p6 }
  0x36   :  { %773 = shalt.err (!%p770_p10)
}
  0x37   :  { %83 = dma.hbm_to_vmem [thread:$0]  %s994_s8, 512, %s78_s24, [#allocation10], %s826_s29, %s826_s29, %s827_s30  }
  0x38   :  { %s782_s2 = scalar_lea.vmem %s92_s26, 512  ;;  %p787_p12 = scmp.lt.s32.totalorder %s92_s26, %s92_s26 }
  0x39   :  { %p783_p11 = scmp.ne.s32.totalorder %s92_s26, %s782_s2  ;;  %p788_p13 = scmp.lt.s32.totalorder %s782_s2, %s782_s2 }
  0x3b   :  { %p789_p0 = por %p788_p13, %p787_p12 }
  0x3d   :  { %p790_p1 = pnand %p789_p0, %p783_p11 }
  0x3f   :  { %793 = shalt.err (!%p790_p1)
}
  0x40   :  { %97 = dma.hbm_to_vmem [thread:$0]  %s996_s10, 512, %s92_s26, [#allocation13], %s826_s29, %s826_s29, %s827_s30  }
  0x41   :  { %814 = dma.done.wait [#allocation4], 256  }
  0x42   :  { %815 = vsyncadd [#allocation4], 4294967040 }
  0x43   :  { %816 = dma.done.wait [#allocation7], 160  }
  0x44   :  { %817 = vsyncadd [#allocation7], 4294967136 }
  0x45   :  { %818 = dma.done.wait [#allocation10], 1536  }
  0x46   :  { %819 = vsyncadd [#allocation10], 4294965760 }
  0x47   :  { %820 = dma.done.wait [#allocation13], 512  }
  0x48   :  { %821 = vsyncadd [#allocation13], 4294966784  ;;  %vm122_vm0 = vcmask 7168   ;;  %v832_v0 = vmov 0.0   ;;  %v124_v1 = vld [vmem:[#allocation3] sm:$0xff]  ;;  %v125_v2 = vld [vmem:[#allocation3 + $0x8] sm:$0xff] }
  0x49   :  { %123 = vst.msk [vmem:[#allocation2] sm:$0xff] %vm122_vm0, %v832_v0  ;;  %603 = vmatprep.subr.mxu0 %v832_v0  ;;  %608 = vmatprep.subr.mxu1 %v832_v0  ;;  %v127_v3 = vadd.f32 %v125_v2, %v124_v1  ;;  %v833_v4 = vmov 0   ;;  %vm834_vm1 = vmmov 0   ;;  %v233_v9 = vld [vmem:[#allocation9 + $0x38] sm:$0xff]  ;;  %v232_v10 = vld [vmem:[#allocation9 + $0x30] sm:$0xff]  ;;  %v231_v11 = vld [vmem:[#allocation9 + $0x28] sm:$0xff] }
  0x4a   :  { %663 = vset.pattern.permute.xlu0 %v833_v4  ;;  %605 = vmatprep.mubr.msk.f32.mxu0 %vm834_vm1, %v832_v0  ;;  %v230_v12 = vld [vmem:[#allocation9 + $0x20] sm:$0xff]  ;;  %v229_v13 = vld [vmem:[#allocation9 + $0x18] sm:$0xff]  ;;  %v228_v14 = vld [vmem:[#allocation9 + $0x10] sm:$0xff]  ;;  %vm152_vm2 = vcmask 64512   ;;  %vm241_vm3 = vcmask 523264   ;;  %vm315_vm4 = vcmask 1041408  }
  0x4b   :  { %128 = vadd.xlane.f32.xlu0 %v127_v3  ;;  %624 = vmatprep.mubr.msk.f32.mxu1 %vm834_vm1, %v832_v0  ;;  %v138_v15 = vld [vmem:[#allocation8] sm:$0xff]  ;;  %v136_v18 = vld [vmem:[#allocation6] sm:$0x3]  ;;  %v227_v19 = vld [vmem:[#allocation9 + $0x8] sm:$0xff]  ;;  %vm365_vm5 = vcmask 261120   ;;  %s835_s17 = smov 96  }
  0x4c   :  { %609 = vmatpush3.msra.mxu1 %v233_v9  ;;  %v226_v20 = vld [vmem:[#allocation9] sm:$0xff]  ;;  %v572_v21 = vld [vmem:[%s989_s3] ss:$0 sm:$0xff]  ;;  %v356_v26 = vld [vmem:[#allocation11 + $0x10] sm:$0xff]  ;;  %vm524_vm6 = vcmask 254976  }
  0x4d   :  { %610 = vmatprep.subr.mxu1 %v832_v0  ;;  %v357_v25 = vld [vmem:[#allocation11 + $0x18] sm:$0xff]  ;;  %v355_v27 = vld [vmem:[#allocation11 + $0x8] sm:$0xff]  ;;  %v354_v28 = vld [vmem:[#allocation11] sm:$0xff] }
  0x4e   :  { %611 = vmatpush3.msra.mxu1 %v232_v10  ;;  %v574_v29 = vld [vmem:[%s991_s5] ss:$0 sm:$0xff]  ;;  %v441_v60 = vld [vmem:[#allocation12 + $0x10] sm:$0xff]  ;;  %v440_v61 = vld [vmem:[#allocation12 + $0x8] sm:$0xff] }
  0x4f   :  { %612 = vmatprep.subr.mxu1 %v832_v0  ;;  %v576_v53 = vld [vmem:[%s992_s6] ss:$0 sm:$0xff]  ;;  %v439_v62 = vld [vmem:[#allocation12] sm:$0xff] }
  0x50   :  { %v126_v5 = vld [vmem:[#allocation2] sm:$0xff]  ;;  %613 = vmatpush3.msra.mxu1 %v231_v11 }
  0x51   :  { %614 = vmatprep.subr.mxu1 %v832_v0  ;;  %v577_v55 = vld [vmem:[%s993_s7] ss:$0 sm:$0xff] }
  0x52   :  { %615 = vmatpush3.msra.mxu1 %v230_v12  ;;  %v442_v59 = vld [vmem:[#allocation12 + $0x18] sm:$0xff] }
  0x53   :  { %616 = vmatprep.subr.mxu1 %v832_v0  ;;  %v580_v3 = vld [vmem:[%s997_s11] ss:$0 sm:$0xff]  ;;  %s837_s11 = smov [#allocation14]  }
  0x54   :  { %617 = vmatpush3.msra.mxu1 %v229_v13  ;;  %v578_v4 = vld [vmem:[%s995_s9] ss:$0 sm:$0xff]  ;;  %s836_s9 = smov 32   ;;  %s560_s19 = sshll.u32 %s837_s11, 4  ;;  %s561_s19 = int_to_ptr.vmem [resolvable:$true] %s560_s19 }
  0x55   :  { %618 = vmatprep.subr.mxu1 %v832_v0  ;;  %s794_s20 = scalar_lea.vmem %s561_s19, 32  ;;  %p799_p3 = scmp.lt.s32.totalorder %s561_s19, %s561_s19 }
  0x56   :  { %619 = vmatpush3.msra.mxu1 %v228_v14  ;;  %p795_p2 = scmp.ne.s32.totalorder %s561_s19, %s794_s20  ;;  %p800_p4 = scmp.lt.s32.totalorder %s794_s20, %s794_s20 }
  0x57   :  { %620 = vmatprep.subr.mxu1 %v832_v0 }
  0x58   :  { %621 = vmatpush3.msra.mxu1 %v227_v19  ;;  %p801_p5 = por %p800_p4, %p799_p3 }
  0x59   :  { %622 = vmatprep.subr.mxu1 %v832_v0 }
  0x5a   :  { %623 = vmatpush3.msra.mxu1 %v226_v20  ;;  %p802_p6 = pnand %p801_p5, %p795_p2 }
  0xd4   :  { %v129_v6 = vpop.xlane.xlu0 %128 }
  0xd5   :  { %v130_v7 = vadd.f32 %v129_v6, %v126_v5 }
  0xd7   :  { %132 = vst.msk [vmem:[#allocation2] sm:$0xff] %vm122_vm0, %v130_v7 }
  0xde   :  { %v137_v8 = vld [vmem:[#allocation2] sm:$0xff] }
  0xdf   :  { %141 = vperm.xlu0 %663, %v137_v8  }
 0x15a   :  { %v142_v16 = vpop.permute.xlu0 %141 }
 0x15b   :  { %v144_v17 = vmul.f32 %v142_v16, %v138_v15 }
 0x15d   :  { %604 = vmatpush3.msra.mxu0 %v144_v17 }
 0x15e   :  { %606 = vmatmul.mubr.msk.f32.vlgmr.msra.gmra.mxu0 %vm152_vm2, %v136_v18  ;;  %627 = vmatprep.subr.mxu0 %v832_v0 }
 0x15f   :  { %635 = vmatprep.mubr.msk.f32.mxu0 %vm834_vm1, %v832_v0  ;;  %628 = vmatpush3.msra.mxu0 %v357_v25 }
 0x160   :  { %629 = vmatprep.subr.mxu0 %v832_v0 }
 0x161   :  { %630 = vmatpush3.msra.mxu0 %v356_v26 }
 0x162   :  { %631 = vmatprep.subr.mxu0 %v832_v0 }
 0x163   :  { %632 = vmatpush3.msra.mxu0 %v355_v27 }
 0x164   :  { %633 = vmatprep.subr.mxu0 %v832_v0 }
 0x165   :  { %634 = vmatpush3.msra.mxu0 %v354_v28 }
 0x166   :  { %638 = vmatprep.subr.mxu0 %v832_v0 }
 0x21e   :  { %v222_v22 = vpop.f32.mrf.mxu0 }
 0x21f   :  { %v223_v23 = vadd.f32 %v572_v21, %v222_v22 }
 0x220   :  { %v607_v24 = vpop.f32.mrf.mxu0 }
 0x221   :  { %625 = vmatmul.mubr.msk.f32.vlgmr.msra.gmra.mxu1 %vm241_vm3, %v223_v23 }
 0x2e1   :  { %v311_v30 = vpop.f32.mrf.mxu1 }
 0x2e2   :  { %v312_v31 = vadd.f32 %v574_v29, %v311_v30 }
 0x2e3   :  { %v626_v32 = vpop.f32.mrf.mxu1 }
 0x2e4   :  { %v316_v33 = vsel %vm315_vm4, %v312_v31, 0.0 }
 0x2e5   :  { %v317_v34 = vrot.slane %v316_v33, 4 }
 0x2e7   :  { %v318_v35 = vadd.f32 %v317_v34, %v316_v33 }
 0x2e9   :  { %v319_v36 = vrot.slane %v318_v35, 2 }
 0x2eb   :  { %v320_v37 = vadd.f32 %v319_v36, %v318_v35 }
 0x2ed   :  { %v321_v38 = vrot.slane %v320_v37, 1 }
 0x2ef   :  { %v322_v39 = vadd.f32 %v321_v38, %v320_v37 }
 0x2f1   :  { %v323_v40 = vmul.f32 0.5, %v322_v39 }
 0x2f3   :  { %v324_v41 = vsub.f32 %v312_v31, %v323_v40 }
 0x2f5   :  { %v325_v42 = vmul.f32 %v324_v41, %v324_v41 }
 0x2f7   :  { %v326_v43 = vsel %vm315_vm4, %v325_v42, 0.0 }
 0x2f8   :  { %v327_v44 = vrot.slane %v326_v43, 4 }
 0x2fa   :  { %v328_v45 = vadd.f32 %v327_v44, %v326_v43 }
 0x2fc   :  { %v329_v46 = vrot.slane %v328_v45, 2 }
 0x2fe   :  { %v330_v47 = vadd.f32 %v329_v46, %v328_v45 }
 0x300   :  { %v331_v48 = vrot.slane %v330_v47, 1 }
 0x302   :  { %v332_v49 = vadd.f32 %v331_v48, %v330_v47 }
 0x304   :  { %v333_v50 = vmul.f32 0.5, %v332_v49 }
 0x306   :  { %v334_v51 = vadd.f32 1e-05, %v333_v50 }
 0x308   :  { %664 = vrsqrt.f32 %v334_v51 }
 0x315   :  { %v665_v52 = vpop.eup %664 }
 0x316   :  { %v336_v54 = vmul.f32 %v665_v52, %v324_v41 }
 0x318   :  { %v344_v56 = vmul.f32 %v576_v53, %v336_v54 }
 0x31a   :  { %v352_v57 = vadd.f32 %v577_v55, %v344_v56 }
 0x31c   :  { %v353_v58 = vmax.f32 %v352_v57, 0.0 }
 0x31e   :  { %450 = vrot.lane.b32.xlu1 %v353_v58, %s835_s17  ;;  %636 = vmatmul.mubr.msk.f32.vlgmr.msra.gmra.mxu0 %vm365_vm5, %v353_v58 }
 0x31f   :  { %639 = vmatpush3.msra.mxu0 %v442_v59  ;;  %646 = vmatprep.mubr.msk.f32.mxu0 %vm834_vm1, %v832_v0 }
 0x320   :  { %640 = vmatprep.subr.mxu0 %v832_v0 }
 0x321   :  { %641 = vmatpush3.msra.mxu0 %v441_v60 }
 0x322   :  { %642 = vmatprep.subr.mxu0 %v832_v0 }
 0x323   :  { %643 = vmatpush3.msra.mxu0 %v440_v61 }
 0x324   :  { %644 = vmatprep.subr.mxu0 %v832_v0 }
 0x325   :  { %645 = vmatpush3.msra.mxu0 %v439_v62 }
 0x390   :  { %v451_v63 = vpop.permute.xlu1 %450 }
 0x391   :  { %647 = vmatmul.mubr.msk.f32.vlgmr.msra.gmra.mxu0 %vm365_vm5, %v451_v63 }
 0x3de   :  { %v435_v1 = vpop.f32.mrf.mxu0 }
 0x3df   :  { %v436_v8 = vadd.f32 %v578_v4, %v435_v1 }
 0x3e0   :  { %v637_v2 = vpop.f32.mrf.mxu0 }
 0x3e1   :  { %v525_v9 = vsel %vm524_vm6, %v436_v8, -inf }
 0x451   :  { %v520_v5 = vpop.f32.mrf.mxu0 }
 0x452   :  { %v521_v6 = vadd.f32 %v580_v3, %v520_v5 }
 0x453   :  { %v648_v7 = vpop.f32.mrf.mxu0 }
 0x454   :  { %v536_v0 = vsel %vm524_vm6, %v521_v6, -inf }
 0x455   :  { %537 = vmax.xlane.f32.xlu1 %v536_v0 }
 0x459   :  { %526 = vmax.xlane.f32.xlu1 %v525_v9 }
 0x4de   :  { %v538_v10 = vpop.xlane.xlu1 %537 }
 0x4df   :  { %v539_v11 = vsub.f32 %v521_v6, %v538_v10 }
 0x4e1   :  { %v540_v12 = vmul.f32 1.442695, %v539_v11 }
 0x4e2   :  { %v527_v13 = vpop.xlane.xlu1 %526 }
 0x4e3   :  { %666 = vpow2.f32 %v540_v12  ;;  %v528_v14 = vsub.f32 %v436_v8, %v527_v13 }
 0x4e5   :  { %v529_v15 = vmul.f32 1.442695, %v528_v14 }
 0x4e7   :  { %668 = vpow2.f32 %v529_v15 }
 0x4f0   :  { %v667_v16 = vpop.eup %666 }
 0x4f1   :  { %v542_v17 = vsel %vm524_vm6, %v667_v16, 0.0 }
 0x4f2   :  { %543 = vadd.xlane.f32.xlu1 %v542_v17 }
 0x4f4   :  { %v669_v18 = vpop.eup %668 }
 0x4f5   :  { %v531_v19 = vsel %vm524_vm6, %v669_v18, 0.0 }
 0x4f6   :  { %532 = vadd.xlane.f32.xlu0 %v531_v19 }
 0x57b   :  { %v544_v20 = vpop.xlane.xlu1 %543 }
 0x57c   :  { %670 = vrcp.f32 %v544_v20 }
 0x57f   :  { %v533_v23 = vpop.xlane.xlu0 %532 }
 0x580   :  { %672 = vrcp.f32 %v533_v23 }
 0x589   :  { %v671_v21 = vpop.eup %670 }
 0x58a   :  { %v546_v22 = vmul.f32 %v671_v21, %v667_v16 }
 0x58c   :  { %548 = vrot.lane.b32.xlu1 %v546_v22, %s836_s9 }
 0x58d   :  { %v673_v24 = vpop.eup %672 }
 0x58e   :  { %v535_v25 = vmul.f32 %v673_v24, %v669_v18 }
 0x5fe   :  { %v549_v26 = vpop.permute.xlu1 %548 }
 0x5ff   :  { %v551_v27 = vsel %vm365_vm5, %v535_v25, %v549_v26 }
 0x600   :  { %v552_v28 = vsel %vm241_vm3, %v551_v27, 0.0 }
 0x601   :  { %553 = vst [vmem:[#allocation14] sm:$0x3] %v552_v28 }
 0x602   :  { %805 = shalt.err (!%p802_p6)
}
 0x603   :  { %563 = dma.vmem_to_hbm [thread:$0]  %s561_s19, 32, %s998_s12, [#allocation5]  }
 0x604   :  { %822 = dma.done.wait [#allocation5], 32  }
 0x605   :  { %823 = vsyncadd [#allocation5], 4294967264 }
 0x606   :  { %567 = vsyncpa [#allocation4], 1 }
 0x607   :  { %568 = vsyncpa [#allocation7], 1 }
 0x608   :  { %569 = vsyncpa [#allocation10], 1 }
 0x609   :  { %570 = vsyncpa [#allocation13], 1 }
 0x60a   :  { %571 = vsyncpa [#allocation5], 1 }

// kernel: tpu_custom_call.1
= control target key start
LH: loop header
LB: loop body
LE: loop exit
PB: predicated region body
PF: predicated region fallthrough
CT: control target
= control target key end

     0   :  { %17 = vsyncpa [#allocation4], 0  ;;  %s986_s0 = inlined_call_operand.hbm [shape: f32[8,256], index: 0, kind: input, shape index: {}]   ;;  %s987_s1 = inlined_call_operand.hbm [shape: f32[2,8], index: 1, kind: input, shape index: {}]   ;;  %s988_s2 = inlined_call_operand.hbm [shape: f32[8,64], index: 2, kind: input, shape index: {}]   ;;  %s989_s3 = inlined_call_operand.vmem [shape: f32[1,64], index: 3, kind: input, shape index: {}]   ;;  %s990_s4 = inlined_call_operand.hbm [shape: f32[64,128], index: 4, kind: input, shape index: {}]   ;;  %s991_s5 = inlined_call_operand.vmem [shape: f32[1,128], index: 5, kind: input, shape index: {}]   ;;  %s992_s6 = inlined_call_operand.vmem [shape: f32[1,128], index: 6, kind: input, shape index: {}]   ;;  %s993_s7 = inlined_call_operand.vmem [shape: f32[1,128], index: 7, kind: input, shape index: {}]   ;;  %s994_s8 = inlined_call_operand.hbm [shape: f32[32,32], index: 8, kind: input, shape index: {}]   ;;  %s995_s9 = inlined_call_operand.vmem [shape: f32[1,32], index: 9, kind: input, shape index: {}]   ;;  %s996_s10 = inlined_call_operand.hbm [shape: f32[32,32], index: 10, kind: input, shape index: {}]   ;;  %s997_s11 = inlined_call_operand.vmem [shape: f32[1,32], index: 11, kind: input, shape index: {}]   ;;  %s998_s12 = inlined_call_operand.hbm [shape: f32[2,128], index: 12, kind: output, shape index: {}]  }
   0x1   :  { %18 = vsyncpa [#allocation7], 0 }
   0x2   :  { %19 = vsyncpa [#allocation10], 0 }
   0x3   :  { %20 = vsyncpa [#allocation13], 0 }
   0x4   :  { %21 = vsyncpa [#allocation5], 0  ;;  %s824_s21 = smov [#allocation6]   ;;  %s825_s23 = smov [#allocation9]  }
   0x5   :  { %s38_s22 = sshll.u32 %s824_s21, 4  ;;  %s59_s24 = sshll.u32 %s825_s23, 4  ;;  %s39_s22 = int_to_ptr.vmem [resolvable:$true] %s38_s22  ;;  %s60_s24 = int_to_ptr.vmem [resolvable:$true] %s59_s24 }
   0x6   :  { %s682_s25 = scalar_lea.vmem %s39_s22, 32  ;;  %p687_p1 = scmp.lt.s32.totalorder %s39_s22, %s39_s22 }
   0x7   :  { %p683_p0 = scmp.ne.s32.totalorder %s39_s22, %s682_s25  ;;  %p688_p2 = scmp.lt.s32.totalorder %s682_s25, %s682_s25 }
   0x9   :  { %p689_p3 = por %p688_p2, %p687_p1 }
   0xb   :  { %p690_p4 = pnand %p689_p3, %p683_p0 }
   0xd   :  { %693 = shalt.err (!%p690_p4)
}
   0xe   :  { %41 = dma.hbm_to_vmem [thread:$0]  %s987_s1, 32, %s39_s22, [#allocation7]  }
   0xf   :  { %s702_s28 = scalar_lea.vmem %s60_s24, 1024  ;;  %p707_p6 = scmp.lt.s32.totalorder %s60_s24, %s60_s24 }
  0x10   :  { %p703_p5 = scmp.ne.s32.totalorder %s60_s24, %s702_s28  ;;  %p708_p7 = scmp.lt.s32.totalorder %s702_s28, %s702_s28 }
  0x12   :  { %p709_p8 = por %p708_p7, %p707_p6 }
  0x14   :  { %p710_p9 = pnand %p709_p8, %p703_p5 }
  0x16   :  { %713 = shalt.err (!%p710_p9)
}
  0x17   :  { %s826_s29 = smov 128   ;;  %s827_s30 = smov 8  }
  0x18   :  { %65 = dma.hbm_to_vmem [thread:$0]  %s990_s4, 1024, %s60_s24, [#allocation10], %s826_s29, %s826_s29, %s827_s30  }
  0x19   :  { %s828_s15 = smov [#allocation3]   ;;  %s829_s17 = smov [#allocation8]  }
  0x1a   :  { %s28_s16 = sshll.u32 %s828_s15, 4  ;;  %s48_s1 = sshll.u32 %s829_s17, 4  ;;  %s29_s16 = int_to_ptr.vmem [resolvable:$true] %s28_s16  ;;  %s49_s1 = int_to_ptr.vmem [resolvable:$true] %s48_s1 }
  0x1b   :  { %s722_s18 = scalar_lea.vmem %s29_s16, 256  ;;  %p727_p11 = scmp.lt.s32.totalorder %s29_s16, %s29_s16 }
  0x1c   :  { %p723_p10 = scmp.ne.s32.totalorder %s29_s16, %s722_s18  ;;  %p728_p12 = scmp.lt.s32.totalorder %s722_s18, %s722_s18 }
  0x1e   :  { %p729_p13 = por %p728_p12, %p727_p11 }
  0x20   :  { %p730_p0 = pnand %p729_p13, %p723_p10 }
  0x22   :  { %733 = shalt.err (!%p730_p0)
}
  0x23   :  { %31 = dma.hbm_to_vmem [thread:$0]  %s986_s0, 256, %s29_s16, [#allocation4]  }
  0x24   :  { %s742_s21 = scalar_lea.vmem %s49_s1, 128  ;;  %p747_p2 = scmp.lt.s32.totalorder %s49_s1, %s49_s1 }
  0x25   :  { %p743_p1 = scmp.ne.s32.totalorder %s49_s1, %s742_s21  ;;  %p748_p3 = scmp.lt.s32.totalorder %s742_s21, %s742_s21 }
  0x27   :  { %p749_p4 = por %p748_p3, %p747_p2 }
  0x29   :  { %p750_p5 = pnand %p749_p4, %p743_p1 }
  0x2b   :  { %753 = shalt.err (!%p750_p5)
}
  0x2c   :  { %51 = dma.hbm_to_vmem [thread:$0]  %s988_s2, 128, %s49_s1, [#allocation7]  }
  0x2d   :  { %s830_s23 = smov [#allocation11]   ;;  %s831_s25 = smov [#allocation12]  }
  0x2e   :  { %s77_s24 = sshll.u32 %s830_s23, 4  ;;  %s91_s26 = sshll.u32 %s831_s25, 4  ;;  %s78_s24 = int_to_ptr.vmem [resolvable:$true] %s77_s24  ;;  %s92_s26 = int_to_ptr.vmem [resolvable:$true] %s91_s26 }
  0x2f   :  { %s762_s27 = scalar_lea.vmem %s78_s24, 512  ;;  %p767_p7 = scmp.lt.s32.totalorder %s78_s24, %s78_s24 }
  0x30   :  { %p763_p6 = scmp.ne.s32.totalorder %s78_s24, %s762_s27  ;;  %p768_p8 = scmp.lt.s32.totalorder %s762_s27, %s762_s27 }
  0x32   :  { %p769_p9 = por %p768_p8, %p767_p7 }
  0x34   :  { %p770_p10 = pnand %p769_p9, %p763_p6 }
  0x36   :  { %773 = shalt.err (!%p770_p10)
}
  0x37   :  { %83 = dma.hbm_to_vmem [thread:$0]  %s994_s8, 512, %s78_s24, [#allocation10], %s826_s29, %s826_s29, %s827_s30  }
  0x38   :  { %s782_s2 = scalar_lea.vmem %s92_s26, 512  ;;  %p787_p12 = scmp.lt.s32.totalorder %s92_s26, %s92_s26 }
  0x39   :  { %p783_p11 = scmp.ne.s32.totalorder %s92_s26, %s782_s2  ;;  %p788_p13 = scmp.lt.s32.totalorder %s782_s2, %s782_s2 }
  0x3b   :  { %p789_p0 = por %p788_p13, %p787_p12 }
  0x3d   :  { %p790_p1 = pnand %p789_p0, %p783_p11 }
  0x3f   :  { %793 = shalt.err (!%p790_p1)
}
  0x40   :  { %97 = dma.hbm_to_vmem [thread:$0]  %s996_s10, 512, %s92_s26, [#allocation13], %s826_s29, %s826_s29, %s827_s30  }
  0x41   :  { %814 = dma.done.wait [#allocation4], 256  }
  0x42   :  { %815 = vsyncadd [#allocation4], 4294967040 }
  0x43   :  { %816 = dma.done.wait [#allocation7], 160  }
  0x44   :  { %817 = vsyncadd [#allocation7], 4294967136 }
  0x45   :  { %818 = dma.done.wait [#allocation10], 1536  }
  0x46   :  { %819 = vsyncadd [#allocation10], 4294965760 }
  0x47   :  { %820 = dma.done.wait [#allocation13], 512  }
  0x48   :  { %821 = vsyncadd [#allocation13], 4294966784  ;;  %vm122_vm0 = vcmask 7168   ;;  %v832_v0 = vmov 0.0   ;;  %v124_v1 = vld [vmem:[#allocation3] sm:$0xff]  ;;  %v125_v2 = vld [vmem:[#allocation3 + $0x8] sm:$0xff] }
  0x49   :  { %123 = vst.msk [vmem:[#allocation2] sm:$0xff] %vm122_vm0, %v832_v0  ;;  %603 = vmatprep.subr.mxu0 %v832_v0  ;;  %608 = vmatprep.subr.mxu1 %v832_v0  ;;  %v127_v3 = vadd.f32 %v125_v2, %v124_v1  ;;  %v833_v4 = vmov 0   ;;  %vm834_vm1 = vmmov 0   ;;  %v233_v9 = vld [vmem:[#allocation9 + $0x38] sm:$0xff]  ;;  %v232_v10 = vld [vmem:[#allocation9 + $0x30] sm:$0xff]  ;;  %v231_v11 = vld [vmem:[#allocation9 + $0x28] sm:$0xff] }
  0x4a   :  { %663 = vset.pattern.permute.xlu0 %v833_v4  ;;  %605 = vmatprep.mubr.msk.f32.mxu0 %vm834_vm1, %v832_v0  ;;  %v230_v12 = vld [vmem:[#allocation9 + $0x20] sm:$0xff]  ;;  %v229_v13 = vld [vmem:[#allocation9 + $0x18] sm:$0xff]  ;;  %v228_v14 = vld [vmem:[#allocation9 + $0x10] sm:$0xff]  ;;  %vm152_vm2 = vcmask 64512   ;;  %vm241_vm3 = vcmask 523264   ;;  %vm315_vm4 = vcmask 1041408  }
  0x4b   :  { %128 = vadd.xlane.f32.xlu0 %v127_v3  ;;  %624 = vmatprep.mubr.msk.f32.mxu1 %vm834_vm1, %v832_v0  ;;  %v138_v15 = vld [vmem:[#allocation8] sm:$0xff]  ;;  %v136_v18 = vld [vmem:[#allocation6] sm:$0x3]  ;;  %v227_v19 = vld [vmem:[#allocation9 + $0x8] sm:$0xff]  ;;  %vm365_vm5 = vcmask 261120   ;;  %s835_s17 = smov 96  }
  0x4c   :  { %609 = vmatpush3.msra.mxu1 %v233_v9  ;;  %v226_v20 = vld [vmem:[#allocation9] sm:$0xff]  ;;  %v572_v21 = vld [vmem:[%s989_s3] ss:$0 sm:$0xff]  ;;  %v356_v26 = vld [vmem:[#allocation11 + $0x10] sm:$0xff]  ;;  %vm524_vm6 = vcmask 254976  }
  0x4d   :  { %610 = vmatprep.subr.mxu1 %v832_v0  ;;  %v357_v25 = vld [vmem:[#allocation11 + $0x18] sm:$0xff]  ;;  %v355_v27 = vld [vmem:[#allocation11 + $0x8] sm:$0xff]  ;;  %v354_v28 = vld [vmem:[#allocation11] sm:$0xff] }
  0x4e   :  { %611 = vmatpush3.msra.mxu1 %v232_v10  ;;  %v574_v29 = vld [vmem:[%s991_s5] ss:$0 sm:$0xff]  ;;  %v441_v60 = vld [vmem:[#allocation12 + $0x10] sm:$0xff]  ;;  %v440_v61 = vld [vmem:[#allocation12 + $0x8] sm:$0xff] }
  0x4f   :  { %612 = vmatprep.subr.mxu1 %v832_v0  ;;  %v576_v53 = vld [vmem:[%s992_s6] ss:$0 sm:$0xff]  ;;  %v439_v62 = vld [vmem:[#allocation12] sm:$0xff] }
  0x50   :  { %v126_v5 = vld [vmem:[#allocation2] sm:$0xff]  ;;  %613 = vmatpush3.msra.mxu1 %v231_v11 }
  0x51   :  { %614 = vmatprep.subr.mxu1 %v832_v0  ;;  %v577_v55 = vld [vmem:[%s993_s7] ss:$0 sm:$0xff] }
  0x52   :  { %615 = vmatpush3.msra.mxu1 %v230_v12  ;;  %v442_v59 = vld [vmem:[#allocation12 + $0x18] sm:$0xff] }
  0x53   :  { %616 = vmatprep.subr.mxu1 %v832_v0  ;;  %v580_v3 = vld [vmem:[%s997_s11] ss:$0 sm:$0xff]  ;;  %s837_s11 = smov [#allocation14]  }
  0x54   :  { %617 = vmatpush3.msra.mxu1 %v229_v13  ;;  %v578_v4 = vld [vmem:[%s995_s9] ss:$0 sm:$0xff]  ;;  %s836_s9 = smov 32   ;;  %s560_s19 = sshll.u32 %s837_s11, 4  ;;  %s561_s19 = int_to_ptr.vmem [resolvable:$true] %s560_s19 }
  0x55   :  { %618 = vmatprep.subr.mxu1 %v832_v0  ;;  %s794_s20 = scalar_lea.vmem %s561_s19, 32  ;;  %p799_p3 = scmp.lt.s32.totalorder %s561_s19, %s561_s19 }
  0x56   :  { %619 = vmatpush3.msra.mxu1 %v228_v14  ;;  %p795_p2 = scmp.ne.s32.totalorder %s561_s19, %s794_s20  ;;  %p800_p4 = scmp.lt.s32.totalorder %s794_s20, %s794_s20 }
  0x57   :  { %620 = vmatprep.subr.mxu1 %v832_v0 }
  0x58   :  { %621 = vmatpush3.msra.mxu1 %v227_v19  ;;  %p801_p5 = por %p800_p4, %p799_p3 }
  0x59   :  { %622 = vmatprep.subr.mxu1 %v832_v0 }
  0x5a   :  { %623 = vmatpush3.msra.mxu1 %v226_v20  ;;  %p802_p6 = pnand %p801_p5, %p795_p2 }
  0xd4   :  { %v129_v6 = vpop.xlane.xlu0 %128 }
  0xd5   :  { %v130_v7 = vadd.f32 %v129_v6, %v126_v5 }
  0xd7   :  { %132 = vst.msk [vmem:[#allocation2] sm:$0xff] %vm122_vm0, %v130_v7 }
  0xde   :  { %v137_v8 = vld [vmem:[#allocation2] sm:$0xff] }
  0xdf   :  { %141 = vperm.xlu0 %663, %v137_v8  }
 0x15a   :  { %v142_v16 = vpop.permute.xlu0 %141 }
 0x15b   :  { %v144_v17 = vmul.f32 %v142_v16, %v138_v15 }
 0x15d   :  { %604 = vmatpush3.msra.mxu0 %v144_v17 }
 0x15e   :  { %606 = vmatmul.mubr.msk.f32.vlgmr.msra.gmra.mxu0 %vm152_vm2, %v136_v18  ;;  %627 = vmatprep.subr.mxu0 %v832_v0 }
 0x15f   :  { %635 = vmatprep.mubr.msk.f32.mxu0 %vm834_vm1, %v832_v0  ;;  %628 = vmatpush3.msra.mxu0 %v357_v25 }
 0x160   :  { %629 = vmatprep.subr.mxu0 %v832_v0 }
 0x161   :  { %630 = vmatpush3.msra.mxu0 %v356_v26 }
 0x162   :  { %631 = vmatprep.subr.mxu0 %v832_v0 }
 0x163   :  { %632 = vmatpush3.msra.mxu0 %v355_v27 }
 0x164   :  { %633 = vmatprep.subr.mxu0 %v832_v0 }
 0x165   :  { %634 = vmatpush3.msra.mxu0 %v354_v28 }
 0x166   :  { %638 = vmatprep.subr.mxu0 %v832_v0 }
 0x21e   :  { %v222_v22 = vpop.f32.mrf.mxu0 }
 0x21f   :  { %v223_v23 = vadd.f32 %v572_v21, %v222_v22 }
 0x220   :  { %v607_v24 = vpop.f32.mrf.mxu0 }
 0x221   :  { %625 = vmatmul.mubr.msk.f32.vlgmr.msra.gmra.mxu1 %vm241_vm3, %v223_v23 }
 0x2e1   :  { %v311_v30 = vpop.f32.mrf.mxu1 }
 0x2e2   :  { %v312_v31 = vadd.f32 %v574_v29, %v311_v30 }
 0x2e3   :  { %v626_v32 = vpop.f32.mrf.mxu1 }
 0x2e4   :  { %v316_v33 = vsel %vm315_vm4, %v312_v31, 0.0 }
 0x2e5   :  { %v317_v34 = vrot.slane %v316_v33, 4 }
 0x2e7   :  { %v318_v35 = vadd.f32 %v317_v34, %v316_v33 }
 0x2e9   :  { %v319_v36 = vrot.slane %v318_v35, 2 }
 0x2eb   :  { %v320_v37 = vadd.f32 %v319_v36, %v318_v35 }
 0x2ed   :  { %v321_v38 = vrot.slane %v320_v37, 1 }
 0x2ef   :  { %v322_v39 = vadd.f32 %v321_v38, %v320_v37 }
 0x2f1   :  { %v323_v40 = vmul.f32 0.5, %v322_v39 }
 0x2f3   :  { %v324_v41 = vsub.f32 %v312_v31, %v323_v40 }
 0x2f5   :  { %v325_v42 = vmul.f32 %v324_v41, %v324_v41 }
 0x2f7   :  { %v326_v43 = vsel %vm315_vm4, %v325_v42, 0.0 }
 0x2f8   :  { %v327_v44 = vrot.slane %v326_v43, 4 }
 0x2fa   :  { %v328_v45 = vadd.f32 %v327_v44, %v326_v43 }
 0x2fc   :  { %v329_v46 = vrot.slane %v328_v45, 2 }
 0x2fe   :  { %v330_v47 = vadd.f32 %v329_v46, %v328_v45 }
 0x300   :  { %v331_v48 = vrot.slane %v330_v47, 1 }
 0x302   :  { %v332_v49 = vadd.f32 %v331_v48, %v330_v47 }
 0x304   :  { %v333_v50 = vmul.f32 0.5, %v332_v49 }
 0x306   :  { %v334_v51 = vadd.f32 1e-05, %v333_v50 }
 0x308   :  { %664 = vrsqrt.f32 %v334_v51 }
 0x315   :  { %v665_v52 = vpop.eup %664 }
 0x316   :  { %v336_v54 = vmul.f32 %v665_v52, %v324_v41 }
 0x318   :  { %v344_v56 = vmul.f32 %v576_v53, %v336_v54 }
 0x31a   :  { %v352_v57 = vadd.f32 %v577_v55, %v344_v56 }
 0x31c   :  { %v353_v58 = vmax.f32 %v352_v57, 0.0 }
 0x31e   :  { %450 = vrot.lane.b32.xlu1 %v353_v58, %s835_s17  ;;  %636 = vmatmul.mubr.msk.f32.vlgmr.msra.gmra.mxu0 %vm365_vm5, %v353_v58 }
 0x31f   :  { %639 = vmatpush3.msra.mxu0 %v442_v59  ;;  %646 = vmatprep.mubr.msk.f32.mxu0 %vm834_vm1, %v832_v0 }
 0x320   :  { %640 = vmatprep.subr.mxu0 %v832_v0 }
 0x321   :  { %641 = vmatpush3.msra.mxu0 %v441_v60 }
 0x322   :  { %642 = vmatprep.subr.mxu0 %v832_v0 }
 0x323   :  { %643 = vmatpush3.msra.mxu0 %v440_v61 }
 0x324   :  { %644 = vmatprep.subr.mxu0 %v832_v0 }
 0x325   :  { %645 = vmatpush3.msra.mxu0 %v439_v62 }
 0x390   :  { %v451_v63 = vpop.permute.xlu1 %450 }
 0x391   :  { %647 = vmatmul.mubr.msk.f32.vlgmr.msra.gmra.mxu0 %vm365_vm5, %v451_v63 }
 0x3de   :  { %v435_v1 = vpop.f32.mrf.mxu0 }
 0x3df   :  { %v436_v8 = vadd.f32 %v578_v4, %v435_v1 }
 0x3e0   :  { %v637_v2 = vpop.f32.mrf.mxu0 }
 0x3e1   :  { %v525_v9 = vsel %vm524_vm6, %v436_v8, -inf }
 0x451   :  { %v520_v5 = vpop.f32.mrf.mxu0 }
 0x452   :  { %v521_v6 = vadd.f32 %v580_v3, %v520_v5 }
 0x453   :  { %v648_v7 = vpop.f32.mrf.mxu0 }
 0x454   :  { %v536_v0 = vsel %vm524_vm6, %v521_v6, -inf }
 0x455   :  { %537 = vmax.xlane.f32.xlu1 %v536_v0 }
 0x459   :  { %526 = vmax.xlane.f32.xlu1 %v525_v9 }
 0x4de   :  { %v538_v10 = vpop.xlane.xlu1 %537 }
 0x4df   :  { %v539_v11 = vsub.f32 %v521_v6, %v538_v10 }
 0x4e1   :  { %v540_v12 = vmul.f32 1.442695, %v539_v11 }
 0x4e2   :  { %v527_v13 = vpop.xlane.xlu1 %526 }
 0x4e3   :  { %666 = vpow2.f32 %v540_v12  ;;  %v528_v14 = vsub.f32 %v436_v8, %v527_v13 }
 0x4e5   :  { %v529_v15 = vmul.f32 1.442695, %v528_v14 }
 0x4e7   :  { %668 = vpow2.f32 %v529_v15 }
 0x4f0   :  { %v667_v16 = vpop.eup %666 }
 0x4f1   :  { %v542_v17 = vsel %vm524_vm6, %v667_v16, 0.0 }
 0x4f2   :  { %543 = vadd.xlane.f32.xlu1 %v542_v17 }
 0x4f4   :  { %v669_v18 = vpop.eup %668 }
 0x4f5   :  { %v531_v19 = vsel %vm524_vm6, %v669_v18, 0.0 }
 0x4f6   :  { %532 = vadd.xlane.f32.xlu0 %v531_v19 }
 0x57b   :  { %v544_v20 = vpop.xlane.xlu1 %543 }
 0x57c   :  { %670 = vrcp.f32 %v544_v20 }
 0x57f   :  { %v533_v23 = vpop.xlane.xlu0 %532 }
 0x580   :  { %672 = vrcp.f32 %v533_v23 }
 0x589   :  { %v671_v21 = vpop.eup %670 }
 0x58a   :  { %v546_v22 = vmul.f32 %v671_v21, %v667_v16 }
 0x58c   :  { %548 = vrot.lane.b32.xlu1 %v546_v22, %s836_s9 }
 0x58d   :  { %v673_v24 = vpop.eup %672 }
 0x58e   :  { %v535_v25 = vmul.f32 %v673_v24, %v669_v18 }
 0x5fe   :  { %v549_v26 = vpop.permute.xlu1 %548 }
 0x5ff   :  { %v551_v27 = vsel %vm365_vm5, %v535_v25, %v549_v26 }
 0x600   :  { %v552_v28 = vsel %vm241_vm3, %v551_v27, 0.0 }
 0x601   :  { %553 = vst [vmem:[#allocation14] sm:$0x3] %v552_v28 }
 0x602   :  { %805 = shalt.err (!%p802_p6)
}
 0x603   :  { %563 = dma.vmem_to_hbm [thread:$0]  %s561_s19, 32, %s998_s12, [#allocation5]  }
 0x604   :  { %822 = dma.done.wait [#allocation5], 32  }
 0x605   :  { %823 = vsyncadd [#allocation5], 4294967264 }
 0x606   :  { %567 = vsyncpa [#allocation4], 1 }
 0x607   :  { %568 = vsyncpa [#allocation7], 1 }
 0x608   :  { %569 = vsyncpa [#allocation10], 1 }
 0x609   :  { %570 = vsyncpa [#allocation13], 1 }
 0x60a   :  { %571 = vsyncpa [#allocation5], 1 }

</bundles_post_ra>
